<compile_context>
chip_gen: v6e
topology: v6e:2x2x1
jax: 0.10.0
libtpu: 0.0.40
codegen_flags: <defaults>
</compile_context>

<pallas_src>
import functools

import jax
import jax.numpy as jnp
from jax import lax
from jax.experimental import pallas as pl
from jax.experimental.pallas import tpu as pltpu

# ----------------------------- tiny synthetic config -----------------------------
VOCAB = 256
HIDDEN = 128
N_LAYERS = 2
N_HEADS = 4
HEAD_DIM = HIDDEN // N_HEADS          # 32
INTERMEDIATE = 256
BATCH = 2
SEQ = 8
EPS = 1e-6


# ----------------------------- in-kernel helpers -----------------------------
def _rms(x, w):
    # f32 elementwise (v5e has no bf16 VPU/EUP) - only MXU inputs are cast to bf16.
    # TODO(synk): on v6e/v7x the SwiGLU elementwise below could run in bf16 for 2x VPU packing.
    var = jnp.mean(x * x, axis=-1, keepdims=True)
    return x * lax.rsqrt(var + EPS) * w


# ----------------------------- fused whole-forward kernel -----------------------------
def _fused_forward_kernel(x_ref, cos_ref, sinm_ref, sinp_ref, bias_ref,
                          an_ref, wqkv_ref, wo_ref, mn_ref, wgu_ref, wd_ref,
                          fnorm_ref, lmhead_ref, *rest,
                          H, Dh, D, I, mode):
    if mode == "loss":
        labels_ref, out_ref, x_sc, attn_sc = rest
    else:
        out_ref, x_sc, attn_sc = rest

    l = pl.program_id(0)
    last = pl.num_programs(0) - 1

    # Residual stream stays resident in VMEM scratch across all layers.
    @pl.when(l == 0)
    def _():
        x_sc[...] = x_ref[...]

    x = x_sc[...]                                         # (N, D) f32

    # ---- attention block ----
    h = _rms(x, an_ref[0])
    qkv = jnp.dot(h.astype(jnp.bfloat16), wqkv_ref[0],
                  preferred_element_type=jnp.float32)     # (N, 3D) f32
    q, k, v = qkv[:, :D], qkv[:, D:2 * D], qkv[:, 2 * D:]

    # Full-width rotary: rotate-half done with two lane rolls (XLU), signs folded
    # into the precomputed sin tiles.  No per-head (8,32) VPU ops.
    cos = cos_ref[...]
    sin_m = sinm_ref[...]
    sin_p = sinp_ref[...]
    half = Dh // 2

    def _rope(t):
        return (t * cos
                + pltpu.roll(t, D - half, axis=1) * sin_m   # t[:, j+half] on 1st half lanes
                + pltpu.roll(t, half, axis=1) * sin_p)      # t[:, j-half] on 2nd half lanes

    q = _rope(q)
    k = _rope(k)

    # Block-diagonal (same-batch) causal additive bias, precomputed in the wrapper.
    bias = bias_ref[...]                                  # (N, N) f32, 0 / -1e30

    # Per head: both batches processed in ONE dot (M = B*S rows) -> H small dots, not B*H.
    for hh in range(H):
        c0 = hh * Dh
        q_h = q[:, c0:c0 + Dh]                            # (N, Dh)
        k_h = k[:, c0:c0 + Dh]
        v_h = v[:, c0:c0 + Dh]
        # QK^T via dot_general (contract Dh on both sides, no explicit transpose).
        s = lax.dot_general(q_h, k_h, (((1,), (1,)), ((), ())),
                            preferred_element_type=jnp.float32) + bias   # (N, N)
        m = jnp.max(s, axis=-1, keepdims=True)
        p = jnp.exp(s - m)
        p = p * pl.reciprocal(jnp.sum(p, axis=-1, keepdims=True), approx=False)
        # Write head output straight into the lane-dense VMEM scratch (no concats).
        attn_sc[:, c0:c0 + Dh] = jnp.dot(p, v_h, preferred_element_type=jnp.float32)

    x = x + jnp.dot(attn_sc[...].astype(jnp.bfloat16), wo_ref[0],
                    preferred_element_type=jnp.float32)   # residual in-kernel

    # ---- MLP block (fused SwiGLU) ----
    h2 = _rms(x, mn_ref[0])
    gu = jnp.dot(h2.astype(jnp.bfloat16), wgu_ref[0],
                 preferred_element_type=jnp.float32)      # (N, 2I)
    g, u = gu[:, :I], gu[:, I:]
    act = (g * jax.nn.sigmoid(g)) * u                     # f32 (v5e-safe)
    x = x + jnp.dot(act.astype(jnp.bfloat16), wd_ref[0],
                    preferred_element_type=jnp.float32)

    x_sc[...] = x                                         # carry to next layer

    # ---- fused head on the last layer step ----
    @pl.when(l == last)
    def _():
        hN = _rms(x, fnorm_ref[...])
        logits = jnp.dot(hN.astype(jnp.bfloat16), lmhead_ref[...],
                         preferred_element_type=jnp.float32)   # (N, V), VMEM-only
        if mode == "loss":
            labels = labels_ref[...]                      # (N, 1) i32
            m = jnp.max(logits, axis=-1, keepdims=True)
            lse = jnp.log(jnp.sum(jnp.exp(logits - m), axis=-1, keepdims=True)) + m
            col = lax.broadcasted_iota(jnp.int32, logits.shape, 1)
            picked = jnp.sum(jnp.where(col == labels, logits, 0.0),
                             axis=-1, keepdims=True)
            valid = (labels != 0).astype(jnp.float32)     # ignore_index=0
            total = jnp.sum((lse - picked) * valid)
            count = jnp.sum(valid)
            # count==0 -> NaN, matching nn.CrossEntropyLoss(ignore_index=0) semantics.
            out_ref[0, 0] = total / count
        else:
            m = jnp.max(logits, axis=-1, keepdims=True)
            col = lax.broadcasted_iota(jnp.int32, logits.shape, 1).astype(jnp.float32)
            cand = jnp.where(logits == m, col, float(VOCAB))   # first-index argmax
            # (N,1) output is fine at N=16; make lane-dense/SMEM when N grows.
            out_ref[...] = jnp.min(cand, axis=-1, keepdims=True).astype(jnp.int32)


def _fused_forward(params, x, cos, sin_m, sin_p, bias, labels2d=None):
    N, D = x.shape
    L = params["wqkv_s"].shape[0]
    I = INTERMEDIATE
    mode = "loss" if labels2d is not None else "pred"
    kern = functools.partial(_fused_forward_kernel, H=N_HEADS, Dh=HEAD_DIM,
                             D=HIDDEN, I=I, mode=mode)

    in_specs = [
        pl.BlockSpec((N, D), lambda l: (0, 0)),              # x (fetched once)
        pl.BlockSpec((N, D), lambda l: (0, 0)),              # cos tile
        pl.BlockSpec((N, D), lambda l: (0, 0)),              # sin_m tile
        pl.BlockSpec((N, D), lambda l: (0, 0)),              # sin_p tile
        pl.BlockSpec((N, N), lambda l: (0, 0)),              # causal/batch bias
        pl.BlockSpec((1, 1, D), lambda l: (l, 0, 0)),        # attn_norm[l]
        pl.BlockSpec((1, D, 3 * D), lambda l: (l, 0, 0)),    # wqkv[l]
        pl.BlockSpec((1, D, D), lambda l: (l, 0, 0)),        # wo[l]
        pl.BlockSpec((1, 1, D), lambda l: (l, 0, 0)),        # mlp_norm[l]
        pl.BlockSpec((1, D, 2 * I), lambda l: (l, 0, 0)),    # wgu[l]
        pl.BlockSpec((1, I, D), lambda l: (l, 0, 0)),        # wd[l]
        pl.BlockSpec((1, D), lambda l: (0, 0)),              # final_norm
        pl.BlockSpec((D, VOCAB), lambda l: (0, 0)),          # lm_head
    ]
    args = [x, cos, sin_m, sin_p, bias,
            params["attn_norm_s"], params["wqkv_s"], params["wo_s"],
            params["mlp_norm_s"], params["wgu_s"], params["wd_s"],
            params["final_norm"], params["lm_head"]]

    if mode == "loss":
        in_specs.append(pl.BlockSpec((N, 1), lambda l: (0, 0)))   # labels
        args.append(labels2d)
        out_shape = jax.ShapeDtypeStruct((1, 1), jnp.float32)
        out_spec = pl.BlockSpec((1, 1), lambda l: (0, 0),
                                memory_space=pltpu.MemorySpace.SMEM)  # scalar in SMEM
    else:
        out_shape = jax.ShapeDtypeStruct((N, 1), jnp.int32)
        out_spec = pl.BlockSpec((N, 1), lambda l: (0, 0))

    return pl.pallas_call(
        kern,
        out_shape=out_shape,
        grid_spec=pltpu.PrefetchScalarGridSpec(
            num_scalar_prefetch=0,
            grid=(L,),
            in_specs=in_specs,
            out_specs=out_spec,
            scratch_shapes=[pltpu.VMEM((N, D), jnp.float32),   # resident residual stream
                            pltpu.VMEM((N, D), jnp.float32)],  # lane-dense attn output
        ),
        compiler_params=pltpu.CompilerParams(
            dimension_semantics=("arbitrary",)),               # layers are sequential
    )(*args)


# ----------------------------- wrapper-side precompute (plain JAX) -----------------------------
def rotary_tiles(B, S, H, Dh):
    """cos tile (B*S, D); sin tiles with rotate-half signs/masks folded in."""
    inv_freq = 1.0 / (10000.0 ** (jnp.arange(0, Dh, 2, dtype=jnp.float32) / Dh))
    t = jnp.arange(S, dtype=jnp.float32)
    freqs = jnp.outer(t, inv_freq)                      # (S, Dh/2)
    emb = jnp.concatenate([freqs, freqs], axis=-1)      # (S, Dh)
    cos, sin = jnp.cos(emb), jnp.sin(emb)
    cosD = jnp.tile(cos, (1, H))                        # (S, D) replicated across heads
    sinD = jnp.tile(sin, (1, H))
    first = ((jnp.arange(H * Dh) % Dh) < (Dh // 2))[None, :]
    sin_m = jnp.where(first, -sinD, 0.0)                # applies to roll(+half) source
    sin_p = jnp.where(first, 0.0, sinD)                 # applies to roll(-half) source
    tile_b = lambda a: jnp.tile(a, (B, 1)).astype(jnp.float32)
    return tile_b(cosD), tile_b(sin_m), tile_b(sin_p)


def attn_bias(B, S):
    """Block-diagonal causal additive bias over the flattened (B*S) token axis."""
    idx = jnp.arange(B * S)
    same = (idx[:, None] // S) == (idx[None, :] // S)
    causal = (idx[None, :] % S) <= (idx[:, None] % S)
    return jnp.where(same & causal, 0.0, -1e30).astype(jnp.float32)


def init_params(key):
    def nrm(k, shape, dtype=jnp.bfloat16, scale=0.02):
        return (scale * jax.random.normal(k, shape, dtype=jnp.float32)).astype(dtype)

    keys = jax.random.split(key, 2 + N_LAYERS)
    qscale = 1.0 / (HEAD_DIM ** 0.5)
    wqkv, wo, wgu, wd = [], [], [], []
    for li in range(N_LAYERS):
        k = jax.random.split(keys[2 + li], 4)
        w_qkv = 0.02 * jax.random.normal(k[0], (HIDDEN, 3 * HIDDEN), dtype=jnp.float32)
        # Fold 1/sqrt(head_dim) into the Q columns offline (rotary is linear -> exact).
        w_qkv = w_qkv.at[:, :HIDDEN].multiply(qscale)
        wqkv.append(w_qkv.astype(jnp.bfloat16))
        wo.append(nrm(k[1], (HIDDEN, HIDDEN)))
        wgu.append(nrm(k[2], (HIDDEN, 2 * INTERMEDIATE)))
        wd.append(nrm(k[3], (INTERMEDIATE, HIDDEN)))

    return {
        "tok_emb": 0.02 * jax.random.normal(keys[0], (VOCAB, HIDDEN), dtype=jnp.float32),
        "final_norm": jnp.ones((1, HIDDEN), jnp.float32),
        "lm_head": nrm(keys[1], (HIDDEN, VOCAB)),            # bf16
        # per-layer weights stacked along a leading layer axis for the grid:
        "attn_norm_s": jnp.ones((N_LAYERS, 1, HIDDEN), jnp.float32),
        "mlp_norm_s": jnp.ones((N_LAYERS, 1, HIDDEN), jnp.float32),
        "wqkv_s": jnp.stack(wqkv),                            # (L, D, 3D) bf16
        "wo_s": jnp.stack(wo),                                # (L, D, D)
        "wgu_s": jnp.stack(wgu),                              # (L, D, 2I)
        "wd_s": jnp.stack(wd),                                # (L, I, D)
    }


def forward(params, input_index, label):
    B, S = input_index.shape
    # TODO(synk): embedding-table gather kept as JAX glue (no clean Pallas gather at this size).
    x = jnp.take(params["tok_emb"], input_index.reshape(-1), axis=0).astype(jnp.float32)
    cos, sin_m, sin_p = rotary_tiles(B, S, N_HEADS, HEAD_DIM)
    bias = attn_bias(B, S)

    if label is not None:
        # Matches the PyTorch module: CE over UNSHIFTED flattened logits, ignore_index=0.
        labels2d = label.reshape(-1, 1).astype(jnp.int32)
        out = _fused_forward(params, x, cos, sin_m, sin_p, bias, labels2d)
        return out[0, 0]
    else:
        pred = _fused_forward(params, x, cos, sin_m, sin_p, bias, None)
        return pred.reshape(B, S)


# ----------------------------- main -----------------------------
if __name__ == "__main__":
    key = jax.random.PRNGKey(0)
    kp, ki, kl = jax.random.split(key, 3)
    params = init_params(kp)

    input_index = jax.random.randint(ki, (BATCH, SEQ), 0, VOCAB, dtype=jnp.int32)
    label = jax.random.randint(kl, (BATCH, SEQ), 1, VOCAB, dtype=jnp.int32)
    # exercise ignore_index=0 on a couple of positions
    label = label.at[0, 0].set(0).at[1, 3].set(0)

    loss = forward(params, input_index, label)
    loss = jax.block_until_ready(loss)
    assert jnp.isfinite(loss), "loss not finite"

    pred = forward(params, input_index, None)
    pred = jax.block_until_ready(pred)
    assert pred.shape == (BATCH, SEQ)

    print("KERNEL_OK")
</pallas_src>

<mosaic_0001>
module attributes {stable_mosaic.version = 11 : i64} {
  func.func @_fused_forward_kernel(%arg0: i32, %arg1: memref<16x128xf32, #tpu.memory_space<vmem>>, %arg2: memref<16x128xf32, #tpu.memory_space<vmem>>, %arg3: memref<16x128xf32, #tpu.memory_space<vmem>>, %arg4: memref<16x128xf32, #tpu.memory_space<vmem>>, %arg5: memref<16x16xf32, #tpu.memory_space<vmem>>, %arg6: memref<1x1x128xf32, #tpu.memory_space<vmem>>, %arg7: memref<1x128x384xbf16, #tpu.memory_space<vmem>>, %arg8: memref<1x128x128xbf16, #tpu.memory_space<vmem>>, %arg9: memref<1x1x128xf32, #tpu.memory_space<vmem>>, %arg10: memref<1x128x512xbf16, #tpu.memory_space<vmem>>, %arg11: memref<1x256x128xbf16, #tpu.memory_space<vmem>>, %arg12: memref<1x128xf32, #tpu.memory_space<vmem>>, %arg13: memref<128x256xbf16, #tpu.memory_space<vmem>>, %arg14: memref<16x1xi32, #tpu.memory_space<vmem>>, %arg15: memref<1x1xf32, #tpu.memory_space<smem>>, %arg16: memref<16x128xf32, #tpu.memory_space<vmem>>, %arg17: memref<16x128xf32, #tpu.memory_space<vmem>>) attributes {dimension_semantics = [#tpu.dimension_semantics<arbitrary>], iteration_bounds = array<i64: 2>, scalar_prefetch = 0 : i64, scratch_operands = 2 : i64, tpu.core_type = #tpu.core_type<tc>, window_params = [{pipeline_mode = #tpu.pipeline_mode<synchronous>, transform_indices = @transform_0, window_bounds = array<i64: 16, 128>}, {pipeline_mode = #tpu.pipeline_mode<synchronous>, transform_indices = @transform_1, window_bounds = array<i64: 16, 128>}, {pipeline_mode = #tpu.pipeline_mode<synchronous>, transform_indices = @transform_2, window_bounds = array<i64: 16, 128>}, {pipeline_mode = #tpu.pipeline_mode<synchronous>, transform_indices = @transform_3, window_bounds = array<i64: 16, 128>}, {pipeline_mode = #tpu.pipeline_mode<synchronous>, transform_indices = @transform_4, window_bounds = array<i64: 16, 16>}, {transform_indices = @transform_5, window_bounds = array<i64: 1, 1, 128>}, {transform_indices = @transform_6, window_bounds = array<i64: 1, 128, 384>}, {transform_indices = @transform_7, window_bounds = array<i64: 1, 128, 128>}, {transform_indices = @transform_8, window_bounds = array<i64: 1, 1, 128>}, {transform_indices = @transform_9, window_bounds = array<i64: 1, 128, 512>}, {transform_indices = @transform_10, window_bounds = array<i64: 1, 256, 128>}, {pipeline_mode = #tpu.pipeline_mode<synchronous>, transform_indices = @transform_11, window_bounds = array<i64: 1, 128>}, {pipeline_mode = #tpu.pipeline_mode<synchronous>, transform_indices = @transform_12, window_bounds = array<i64: 128, 256>}, {pipeline_mode = #tpu.pipeline_mode<synchronous>, transform_indices = @transform_13, window_bounds = array<i64: 16, 1>}, {transform_indices = @transform_14, window_bounds = array<i64: 1, 1>}]} {
    %c0_i32 = arith.constant 0 : i32
    %0 = arith.cmpi eq, %arg0, %c0_i32 : i32
    %1 = arith.extui %0 : i1 to i32
    %c0_i32_0 = arith.constant 0 : i32
    %2 = arith.cmpi ne, %1, %c0_i32_0 : i32
    scf.if %2 {
      %c0_66 = arith.constant 0 : index
      %c0_67 = arith.constant 0 : index
      %153 = vector.load %arg1[%c0_66, %c0_67] : memref<16x128xf32, #tpu.memory_space<vmem>>, vector<16x128xf32>
      %c0_68 = arith.constant 0 : index
      %c0_69 = arith.constant 0 : index
      %154 = vector.load %arg16[%c0_68, %c0_69] : memref<16x128xf32, #tpu.memory_space<vmem>>, vector<16x128xf32>
      tpu.vector_store %arg16[%c0_68, %c0_69], %153 {strides = array<i32>} : memref<16x128xf32, #tpu.memory_space<vmem>>, vector<16x128xf32>,
    } else {
    }
    %c0 = arith.constant 0 : index
    %c0_1 = arith.constant 0 : index
    %3 = vector.load %arg16[%c0, %c0_1] : memref<16x128xf32, #tpu.memory_space<vmem>>, vector<16x128xf32>
    %c0_2 = arith.constant 0 : index
    %c0_3 = arith.constant 0 : index
    %c0_4 = arith.constant 0 : index
    %4 = vector.load %arg6[%c0_2, %c0_3, %c0_4] : memref<1x1x128xf32, #tpu.memory_space<vmem>>, vector<1x1x128xf32>
    %5 = vector.shape_cast %4 : vector<1x1x128xf32> to vector<1x128xf32>
    %6 = arith.mulf %3, %3 : vector<16x128xf32>
    %cst = arith.constant dense<0.000000e+00> : vector<16xf32>
    %7 = vector.multi_reduction <add>, %6, %cst [1] : vector<16x128xf32> to vector<16xf32>
    %8 = vector.shape_cast %7 : vector<16xf32> to vector<16x1xf32>
    %cst_5 = arith.constant 1.280000e+02 : f32
    %9 = vector.broadcast %cst_5 : f32 to vector<16x1xf32>
    %10 = arith.divf %8, %9 : vector<16x1xf32>
    %cst_6 = arith.constant 9.99999997E-7 : f32
    %11 = vector.broadcast %cst_6 : f32 to vector<16x1xf32>
    %12 = arith.addf %10, %11 : vector<16x1xf32>
    %13 = math.rsqrt %12 : vector<16x1xf32>
    %14 = vector.broadcast %13 : vector<16x1xf32> to vector<16x128xf32>
    %15 = arith.mulf %3, %14 : vector<16x128xf32>
    %16 = vector.broadcast %5 : vector<1x128xf32> to vector<16x128xf32>
    %17 = arith.mulf %15, %16 : vector<16x128xf32>
    %18 = arith.truncf %17 : vector<16x128xf32> to vector<16x128xbf16>
    %c0_7 = arith.constant 0 : index
    %c0_8 = arith.constant 0 : index
    %c0_9 = arith.constant 0 : index
    %19 = vector.load %arg7[%c0_7, %c0_8, %c0_9] : memref<1x128x384xbf16, #tpu.memory_space<vmem>>, vector<1x128x384xbf16>
    %20 = vector.shape_cast %19 : vector<1x128x384xbf16> to vector<128x384xbf16>
    %cst_10 = arith.constant dense<0.000000e+00> : vector<16x384xf32>
    %21 = tpu.matmul %18, %20, %cst_10 {dimension_numbers = #tpu.dot_dimension_numbers<[1], [0], [0], [1], [0, 0, 1, 1], [], []>} : vector<16x128xbf16>, vector<128x384xbf16>, vector<16x384xf32> -> vector<16x384xf32>
    %22 = vector.extract_strided_slice %21 {offsets = [0, 0], sizes = [16, 128], strides = [1, 1]} : vector<16x384xf32> to vector<16x128xf32>
    %23 = vector.extract_strided_slice %21 {offsets = [0, 128], sizes = [16, 128], strides = [1, 1]} : vector<16x384xf32> to vector<16x128xf32>
    %24 = vector.extract_strided_slice %21 {offsets = [0, 256], sizes = [16, 128], strides = [1, 1]} : vector<16x384xf32> to vector<16x128xf32>
    %c0_11 = arith.constant 0 : index
    %c0_12 = arith.constant 0 : index
    %25 = vector.load %arg2[%c0_11, %c0_12] : memref<16x128xf32, #tpu.memory_space<vmem>>, vector<16x128xf32>
    %c0_13 = arith.constant 0 : index
    %c0_14 = arith.constant 0 : index
    %26 = vector.load %arg3[%c0_13, %c0_14] : memref<16x128xf32, #tpu.memory_space<vmem>>, vector<16x128xf32>
    %c0_15 = arith.constant 0 : index
    %c0_16 = arith.constant 0 : index
    %27 = vector.load %arg4[%c0_15, %c0_16] : memref<16x128xf32, #tpu.memory_space<vmem>>, vector<16x128xf32>
    %28 = arith.mulf %22, %25 : vector<16x128xf32>
    %c112_i32 = arith.constant 112 : i32
    %29 = tpu.dynamic_rotate %22 by %c112_i32 dim 1 : vector<16x128xf32>, i32 -> vector<16x128xf32>
    %30 = arith.mulf %29, %26 : vector<16x128xf32>
    %31 = arith.addf %28, %30 : vector<16x128xf32>
    %c16_i32 = arith.constant 16 : i32
    %32 = tpu.dynamic_rotate %22 by %c16_i32 dim 1 : vector<16x128xf32>, i32 -> vector<16x128xf32>
    %33 = arith.mulf %32, %27 : vector<16x128xf32>
    %34 = arith.addf %31, %33 : vector<16x128xf32>
    %35 = arith.mulf %23, %25 : vector<16x128xf32>
    %c112_i32_17 = arith.constant 112 : i32
    %36 = tpu.dynamic_rotate %23 by %c112_i32_17 dim 1 : vector<16x128xf32>, i32 -> vector<16x128xf32>
    %37 = arith.mulf %36, %26 : vector<16x128xf32>
    %38 = arith.addf %35, %37 : vector<16x128xf32>
    %c16_i32_18 = arith.constant 16 : i32
    %39 = tpu.dynamic_rotate %23 by %c16_i32_18 dim 1 : vector<16x128xf32>, i32 -> vector<16x128xf32>
    %40 = arith.mulf %39, %27 : vector<16x128xf32>
    %41 = arith.addf %38, %40 : vector<16x128xf32>
    %c0_19 = arith.constant 0 : index
    %c0_20 = arith.constant 0 : index
    %42 = vector.load %arg5[%c0_19, %c0_20] : memref<16x16xf32, #tpu.memory_space<vmem>>, vector<16x16xf32>
    %43 = vector.extract_strided_slice %34 {offsets = [0, 0], sizes = [16, 32], strides = [1, 1]} : vector<16x128xf32> to vector<16x32xf32>
    %44 = vector.extract_strided_slice %41 {offsets = [0, 0], sizes = [16, 32], strides = [1, 1]} : vector<16x128xf32> to vector<16x32xf32>
    %45 = vector.extract_strided_slice %24 {offsets = [0, 0], sizes = [16, 32], strides = [1, 1]} : vector<16x128xf32> to vector<16x32xf32>
    %cst_21 = arith.constant dense<0.000000e+00> : vector<16x16xf32>
    %46 = tpu.matmul %43, %44, %cst_21 {dimension_numbers = #tpu.dot_dimension_numbers<[1], [1], [0], [0], [0, 0, 1, 0], [], []>} : vector<16x32xf32>, vector<16x32xf32>, vector<16x16xf32> -> vector<16x16xf32>
    %47 = arith.addf %46, %42 : vector<16x16xf32>
    %cst_22 = arith.constant dense<0xFF800000> : vector<16xf32>
    %48 = vector.multi_reduction <maximumf>, %47, %cst_22 [1] : vector<16x16xf32> to vector<16xf32>
    %49 = vector.shape_cast %48 : vector<16xf32> to vector<16x1xf32>
    %50 = vector.broadcast %49 : vector<16x1xf32> to vector<16x16xf32>
    %51 = arith.subf %47, %50 : vector<16x16xf32>
    %52 = math.exp %51 : vector<16x16xf32>
    %cst_23 = arith.constant dense<0.000000e+00> : vector<16xf32>
    %53 = vector.multi_reduction <add>, %52, %cst_23 [1] : vector<16x16xf32> to vector<16xf32>
    %54 = vector.shape_cast %53 : vector<16xf32> to vector<16x1xf32>
    %55 = tpu.reciprocal %54 : vector<16x1xf32> -> vector<16x1xf32>
    %56 = vector.broadcast %55 : vector<16x1xf32> to vector<16x16xf32>
    %57 = arith.mulf %52, %56 : vector<16x16xf32>
    %cst_24 = arith.constant dense<0.000000e+00> : vector<16x32xf32>
    %58 = tpu.matmul %57, %45, %cst_24 {dimension_numbers = #tpu.dot_dimension_numbers<[1], [0], [0], [1], [0, 0, 1, 1], [], []>} : vector<16x16xf32>, vector<16x32xf32>, vector<16x32xf32> -> vector<16x32xf32>
    %c0_25 = arith.constant 0 : index
    %c0_26 = arith.constant 0 : index
    %59 = vector.load %arg17[%c0_25, %c0_26] : memref<16x128xf32, #tpu.memory_space<vmem>>, vector<16x32xf32>
    tpu.vector_store %arg17[%c0_25, %c0_26], %58 {strides = array<i32>} : memref<16x128xf32, #tpu.memory_space<vmem>>, vector<16x32xf32>,
    %60 = vector.extract_strided_slice %34 {offsets = [0, 32], sizes = [16, 32], strides = [1, 1]} : vector<16x128xf32> to vector<16x32xf32>
    %61 = vector.extract_strided_slice %41 {offsets = [0, 32], sizes = [16, 32], strides = [1, 1]} : vector<16x128xf32> to vector<16x32xf32>
    %62 = vector.extract_strided_slice %24 {offsets = [0, 32], sizes = [16, 32], strides = [1, 1]} : vector<16x128xf32> to vector<16x32xf32>
    %cst_27 = arith.constant dense<0.000000e+00> : vector<16x16xf32>
    %63 = tpu.matmul %60, %61, %cst_27 {dimension_numbers = #tpu.dot_dimension_numbers<[1], [1], [0], [0], [0, 0, 1, 0], [], []>} : vector<16x32xf32>, vector<16x32xf32>, vector<16x16xf32> -> vector<16x16xf32>
    %64 = arith.addf %63, %42 : vector<16x16xf32>
    %cst_28 = arith.constant dense<0xFF800000> : vector<16xf32>
    %65 = vector.multi_reduction <maximumf>, %64, %cst_28 [1] : vector<16x16xf32> to vector<16xf32>
    %66 = vector.shape_cast %65 : vector<16xf32> to vector<16x1xf32>
    %67 = vector.broadcast %66 : vector<16x1xf32> to vector<16x16xf32>
    %68 = arith.subf %64, %67 : vector<16x16xf32>
    %69 = math.exp %68 : vector<16x16xf32>
    %cst_29 = arith.constant dense<0.000000e+00> : vector<16xf32>
    %70 = vector.multi_reduction <add>, %69, %cst_29 [1] : vector<16x16xf32> to vector<16xf32>
    %71 = vector.shape_cast %70 : vector<16xf32> to vector<16x1xf32>
    %72 = tpu.reciprocal %71 : vector<16x1xf32> -> vector<16x1xf32>
    %73 = vector.broadcast %72 : vector<16x1xf32> to vector<16x16xf32>
    %74 = arith.mulf %69, %73 : vector<16x16xf32>
    %cst_30 = arith.constant dense<0.000000e+00> : vector<16x32xf32>
    %75 = tpu.matmul %74, %62, %cst_30 {dimension_numbers = #tpu.dot_dimension_numbers<[1], [0], [0], [1], [0, 0, 1, 1], [], []>} : vector<16x16xf32>, vector<16x32xf32>, vector<16x32xf32> -> vector<16x32xf32>
    %c0_31 = arith.constant 0 : index
    %c32 = arith.constant 32 : index
    %76 = vector.load %arg17[%c0_31, %c32] : memref<16x128xf32, #tpu.memory_space<vmem>>, vector<16x32xf32>
    tpu.vector_store %arg17[%c0_31, %c32], %75 {strides = array<i32>} : memref<16x128xf32, #tpu.memory_space<vmem>>, vector<16x32xf32>,
    %77 = vector.extract_strided_slice %34 {offsets = [0, 64], sizes = [16, 32], strides = [1, 1]} : vector<16x128xf32> to vector<16x32xf32>
    %78 = vector.extract_strided_slice %41 {offsets = [0, 64], sizes = [16, 32], strides = [1, 1]} : vector<16x128xf32> to vector<16x32xf32>
    %79 = vector.extract_strided_slice %24 {offsets = [0, 64], sizes = [16, 32], strides = [1, 1]} : vector<16x128xf32> to vector<16x32xf32>
    %cst_32 = arith.constant dense<0.000000e+00> : vector<16x16xf32>
    %80 = tpu.matmul %77, %78, %cst_32 {dimension_numbers = #tpu.dot_dimension_numbers<[1], [1], [0], [0], [0, 0, 1, 0], [], []>} : vector<16x32xf32>, vector<16x32xf32>, vector<16x16xf32> -> vector<16x16xf32>
    %81 = arith.addf %80, %42 : vector<16x16xf32>
    %cst_33 = arith.constant dense<0xFF800000> : vector<16xf32>
    %82 = vector.multi_reduction <maximumf>, %81, %cst_33 [1] : vector<16x16xf32> to vector<16xf32>
    %83 = vector.shape_cast %82 : vector<16xf32> to vector<16x1xf32>
    %84 = vector.broadcast %83 : vector<16x1xf32> to vector<16x16xf32>
    %85 = arith.subf %81, %84 : vector<16x16xf32>
    %86 = math.exp %85 : vector<16x16xf32>
    %cst_34 = arith.constant dense<0.000000e+00> : vector<16xf32>
    %87 = vector.multi_reduction <add>, %86, %cst_34 [1] : vector<16x16xf32> to vector<16xf32>
    %88 = vector.shape_cast %87 : vector<16xf32> to vector<16x1xf32>
    %89 = tpu.reciprocal %88 : vector<16x1xf32> -> vector<16x1xf32>
    %90 = vector.broadcast %89 : vector<16x1xf32> to vector<16x16xf32>
    %91 = arith.mulf %86, %90 : vector<16x16xf32>
    %cst_35 = arith.constant dense<0.000000e+00> : vector<16x32xf32>
    %92 = tpu.matmul %91, %79, %cst_35 {dimension_numbers = #tpu.dot_dimension_numbers<[1], [0], [0], [1], [0, 0, 1, 1], [], []>} : vector<16x16xf32>, vector<16x32xf32>, vector<16x32xf32> -> vector<16x32xf32>
    %c0_36 = arith.constant 0 : index
    %c64 = arith.constant 64 : index
    %93 = vector.load %arg17[%c0_36, %c64] : memref<16x128xf32, #tpu.memory_space<vmem>>, vector<16x32xf32>
    tpu.vector_store %arg17[%c0_36, %c64], %92 {strides = array<i32>} : memref<16x128xf32, #tpu.memory_space<vmem>>, vector<16x32xf32>,
    %94 = vector.extract_strided_slice %34 {offsets = [0, 96], sizes = [16, 32], strides = [1, 1]} : vector<16x128xf32> to vector<16x32xf32>
    %95 = vector.extract_strided_slice %41 {offsets = [0, 96], sizes = [16, 32], strides = [1, 1]} : vector<16x128xf32> to vector<16x32xf32>
    %96 = vector.extract_strided_slice %24 {offsets = [0, 96], sizes = [16, 32], strides = [1, 1]} : vector<16x128xf32> to vector<16x32xf32>
    %cst_37 = arith.constant dense<0.000000e+00> : vector<16x16xf32>
    %97 = tpu.matmul %94, %95, %cst_37 {dimension_numbers = #tpu.dot_dimension_numbers<[1], [1], [0], [0], [0, 0, 1, 0], [], []>} : vector<16x32xf32>, vector<16x32xf32>, vector<16x16xf32> -> vector<16x16xf32>
    %98 = arith.addf %97, %42 : vector<16x16xf32>
    %cst_38 = arith.constant dense<0xFF800000> : vector<16xf32>
    %99 = vector.multi_reduction <maximumf>, %98, %cst_38 [1] : vector<16x16xf32> to vector<16xf32>
    %100 = vector.shape_cast %99 : vector<16xf32> to vector<16x1xf32>
    %101 = vector.broadcast %100 : vector<16x1xf32> to vector<16x16xf32>
    %102 = arith.subf %98, %101 : vector<16x16xf32>
    %103 = math.exp %102 : vector<16x16xf32>
    %cst_39 = arith.constant dense<0.000000e+00> : vector<16xf32>
    %104 = vector.multi_reduction <add>, %103, %cst_39 [1] : vector<16x16xf32> to vector<16xf32>
    %105 = vector.shape_cast %104 : vector<16xf32> to vector<16x1xf32>
    %106 = tpu.reciprocal %105 : vector<16x1xf32> -> vector<16x1xf32>
    %107 = vector.broadcast %106 : vector<16x1xf32> to vector<16x16xf32>
    %108 = arith.mulf %103, %107 : vector<16x16xf32>
    %cst_40 = arith.constant dense<0.000000e+00> : vector<16x32xf32>
    %109 = tpu.matmul %108, %96, %cst_40 {dimension_numbers = #tpu.dot_dimension_numbers<[1], [0], [0], [1], [0, 0, 1, 1], [], []>} : vector<16x16xf32>, vector<16x32xf32>, vector<16x32xf32> -> vector<16x32xf32>
    %c0_41 = arith.constant 0 : index
    %c96 = arith.constant 96 : index
    %110 = vector.load %arg17[%c0_41, %c96] : memref<16x128xf32, #tpu.memory_space<vmem>>, vector<16x32xf32>
    tpu.vector_store %arg17[%c0_41, %c96], %109 {strides = array<i32>} : memref<16x128xf32, #tpu.memory_space<vmem>>, vector<16x32xf32>,
    %c0_42 = arith.constant 0 : index
    %c0_43 = arith.constant 0 : index
    %111 = vector.load %arg17[%c0_42, %c0_43] : memref<16x128xf32, #tpu.memory_space<vmem>>, vector<16x128xf32>
    %112 = arith.truncf %111 : vector<16x128xf32> to vector<16x128xbf16>
    %c0_44 = arith.constant 0 : index
    %c0_45 = arith.constant 0 : index
    %c0_46 = arith.constant 0 : index
    %113 = vector.load %arg8[%c0_44, %c0_45, %c0_46] : memref<1x128x128xbf16, #tpu.memory_space<vmem>>, vector<1x128x128xbf16>
    %114 = vector.shape_cast %113 : vector<1x128x128xbf16> to vector<128x128xbf16>
    %cst_47 = arith.constant dense<0.000000e+00> : vector<16x128xf32>
    %115 = tpu.matmul %112, %114, %cst_47 {dimension_numbers = #tpu.dot_dimension_numbers<[1], [0], [0], [1], [0, 0, 1, 1], [], []>} : vector<16x128xbf16>, vector<128x128xbf16>, vector<16x128xf32> -> vector<16x128xf32>
    %116 = arith.addf %3, %115 : vector<16x128xf32>
    %c0_48 = arith.constant 0 : index
    %c0_49 = arith.constant 0 : index
    %c0_50 = arith.constant 0 : index
    %117 = vector.load %arg9[%c0_48, %c0_49, %c0_50] : memref<1x1x128xf32, #tpu.memory_space<vmem>>, vector<1x1x128xf32>
    %118 = vector.shape_cast %117 : vector<1x1x128xf32> to vector<1x128xf32>
    %119 = arith.mulf %116, %116 : vector<16x128xf32>
    %cst_51 = arith.constant dense<0.000000e+00> : vector<16xf32>
    %120 = vector.multi_reduction <add>, %119, %cst_51 [1] : vector<16x128xf32> to vector<16xf32>
    %121 = vector.shape_cast %120 : vector<16xf32> to vector<16x1xf32>
    %cst_52 = arith.constant 1.280000e+02 : f32
    %122 = vector.broadcast %cst_52 : f32 to vector<16x1xf32>
    %123 = arith.divf %121, %122 : vector<16x1xf32>
    %cst_53 = arith.constant 9.99999997E-7 : f32
    %124 = vector.broadcast %cst_53 : f32 to vector<16x1xf32>
    %125 = arith.addf %123, %124 : vector<16x1xf32>
    %126 = math.rsqrt %125 : vector<16x1xf32>
    %127 = vector.broadcast %126 : vector<16x1xf32> to vector<16x128xf32>
    %128 = arith.mulf %116, %127 : vector<16x128xf32>
    %129 = vector.broadcast %118 : vector<1x128xf32> to vector<16x128xf32>
    %130 = arith.mulf %128, %129 : vector<16x128xf32>
    %131 = arith.truncf %130 : vector<16x128xf32> to vector<16x128xbf16>
    %c0_54 = arith.constant 0 : index
    %c0_55 = arith.constant 0 : index
    %c0_56 = arith.constant 0 : index
    %132 = vector.load %arg10[%c0_54, %c0_55, %c0_56] : memref<1x128x512xbf16, #tpu.memory_space<vmem>>, vector<1x128x512xbf16>
    %133 = vector.shape_cast %132 : vector<1x128x512xbf16> to vector<128x512xbf16>
    %cst_57 = arith.constant dense<0.000000e+00> : vector<16x512xf32>
    %134 = tpu.matmul %131, %133, %cst_57 {dimension_numbers = #tpu.dot_dimension_numbers<[1], [0], [0], [1], [0, 0, 1, 1], [], []>} : vector<16x128xbf16>, vector<128x512xbf16>, vector<16x512xf32> -> vector<16x512xf32>
    %135 = vector.extract_strided_slice %134 {offsets = [0, 0], sizes = [16, 256], strides = [1, 1]} : vector<16x512xf32> to vector<16x256xf32>
    %136 = vector.extract_strided_slice %134 {offsets = [0, 256], sizes = [16, 256], strides = [1, 1]} : vector<16x512xf32> to vector<16x256xf32>
    %137 = arith.negf %135 : vector<16x256xf32>
    %138 = math.exp %137 : vector<16x256xf32>
    %cst_58 = arith.constant 1.000000e+00 : f32
    %139 = vector.broadcast %cst_58 : f32 to vector<16x256xf32>
    %140 = arith.addf %139, %138 : vector<16x256xf32>
    %141 = arith.divf %139, %140 : vector<16x256xf32>
    %142 = arith.mulf %135, %141 : vector<16x256xf32>
    %143 = arith.mulf %142, %136 : vector<16x256xf32>
    %144 = arith.truncf %143 : vector<16x256xf32> to vector<16x256xbf16>
    %c0_59 = arith.constant 0 : index
    %c0_60 = arith.constant 0 : index
    %c0_61 = arith.constant 0 : index
    %145 = vector.load %arg11[%c0_59, %c0_60, %c0_61] : memref<1x256x128xbf16, #tpu.memory_space<vmem>>, vector<1x256x128xbf16>
    %146 = vector.shape_cast %145 : vector<1x256x128xbf16> to vector<256x128xbf16>
    %cst_62 = arith.constant dense<0.000000e+00> : vector<16x128xf32>
    %147 = tpu.matmul %144, %146, %cst_62 {dimension_numbers = #tpu.dot_dimension_numbers<[1], [0], [0], [1], [0, 0, 1, 1], [], []>} : vector<16x256xbf16>, vector<256x128xbf16>, vector<16x128xf32> -> vector<16x128xf32>
    %148 = arith.addf %116, %147 : vector<16x128xf32>
    %c0_63 = arith.constant 0 : index
    %c0_64 = arith.constant 0 : index
    %149 = vector.load %arg16[%c0_63, %c0_64] : memref<16x128xf32, #tpu.memory_space<vmem>>, vector<16x128xf32>
    tpu.vector_store %arg16[%c0_63, %c0_64], %148 {strides = array<i32>} : memref<16x128xf32, #tpu.memory_space<vmem>>, vector<16x128xf32>,
    %c1_i32 = arith.constant 1 : i32
    %150 = arith.cmpi eq, %arg0, %c1_i32 : i32
    %151 = arith.extui %150 : i1 to i32
    %c0_i32_65 = arith.constant 0 : i32
    %152 = arith.cmpi ne, %151, %c0_i32_65 : i32
    scf.if %152 {
      %c0_66 = arith.constant 0 : index
      %c0_67 = arith.constant 0 : index
      %153 = vector.load %arg12[%c0_66, %c0_67] : memref<1x128xf32, #tpu.memory_space<vmem>>, vector<1x128xf32>
      %154 = arith.mulf %148, %148 : vector<16x128xf32>
      %cst_68 = arith.constant dense<0.000000e+00> : vector<16xf32>
      %155 = vector.multi_reduction <add>, %154, %cst_68 [1] : vector<16x128xf32> to vector<16xf32>
      %156 = vector.shape_cast %155 : vector<16xf32> to vector<16x1xf32>
      %cst_69 = arith.constant 1.280000e+02 : f32
      %157 = vector.broadcast %cst_69 : f32 to vector<16x1xf32>
      %158 = arith.divf %156, %157 : vector<16x1xf32>
      %cst_70 = arith.constant 9.99999997E-7 : f32
      %159 = vector.broadcast %cst_70 : f32 to vector<16x1xf32>
      %160 = arith.addf %158, %159 : vector<16x1xf32>
      %161 = math.rsqrt %160 : vector<16x1xf32>
      %162 = vector.broadcast %161 : vector<16x1xf32> to vector<16x128xf32>
      %163 = arith.mulf %148, %162 : vector<16x128xf32>
      %164 = vector.broadcast %153 : vector<1x128xf32> to vector<16x128xf32>
      %165 = arith.mulf %163, %164 : vector<16x128xf32>
      %166 = arith.truncf %165 : vector<16x128xf32> to vector<16x128xbf16>
      %c0_71 = arith.constant 0 : index
      %c0_72 = arith.constant 0 : index
      %167 = vector.load %arg13[%c0_71, %c0_72] : memref<128x256xbf16, #tpu.memory_space<vmem>>, vector<128x256xbf16>
      %cst_73 = arith.constant dense<0.000000e+00> : vector<16x256xf32>
      %168 = tpu.matmul %166, %167, %cst_73 {dimension_numbers = #tpu.dot_dimension_numbers<[1], [0], [0], [1], [0, 0, 1, 1], [], []>} : vector<16x128xbf16>, vector<128x256xbf16>, vector<16x256xf32> -> vector<16x256xf32>
      %c0_74 = arith.constant 0 : index
      %c0_75 = arith.constant 0 : index
      %169 = vector.load %arg14[%c0_74, %c0_75] : memref<16x1xi32, #tpu.memory_space<vmem>>, vector<16x1xi32>
      %cst_76 = arith.constant dense<0xFF800000> : vector<16xf32>
      %170 = vector.multi_reduction <maximumf>, %168, %cst_76 [1] : vector<16x256xf32> to vector<16xf32>
      %171 = vector.shape_cast %170 : vector<16xf32> to vector<16x1xf32>
      %172 = vector.broadcast %171 : vector<16x1xf32> to vector<16x256xf32>
      %173 = arith.subf %168, %172 : vector<16x256xf32>
      %174 = math.exp %173 : vector<16x256xf32>
      %cst_77 = arith.constant dense<0.000000e+00> : vector<16xf32>
      %175 = vector.multi_reduction <add>, %174, %cst_77 [1] : vector<16x256xf32> to vector<16xf32>
      %176 = vector.shape_cast %175 : vector<16xf32> to vector<16x1xf32>
      %177 = math.log %176 : vector<16x1xf32>
      %178 = arith.addf %177, %171 : vector<16x1xf32>
      %179 = tpu.iota {dimensions = array<i32: 1>} : vector<16x256xi32>
      %180 = vector.broadcast %169 : vector<16x1xi32> to vector<16x256xi32>
      %181 = arith.cmpi eq, %179, %180 : vector<16x256xi32>
      %cst_78 = arith.constant 0.000000e+00 : f32
      %182 = vector.broadcast %cst_78 : f32 to vector<16x256xf32>
      %183 = arith.select %181, %168, %182 : vector<16x256xi1>, vector<16x256xf32>
      %cst_79 = arith.constant dense<0.000000e+00> : vector<16xf32>
      %184 = vector.multi_reduction <add>, %183, %cst_79 [1] : vector<16x256xf32> to vector<16xf32>
      %185 = vector.shape_cast %184 : vector<16xf32> to vector<16x1xf32>
      %c0_i32_80 = arith.constant 0 : i32
      %186 = vector.broadcast %c0_i32_80 : i32 to vector<16x1xi32>
      %187 = arith.cmpi ne, %169, %186 : vector<16x1xi32>
      %188 = arith.extui %187 : vector<16x1xi1> to vector<16x1xi32>
      %189 = arith.sitofp %188 : vector<16x1xi32> to vector<16x1xf32>
      %190 = arith.subf %178, %185 : vector<16x1xf32>
      %191 = arith.mulf %190, %189 : vector<16x1xf32>
      %192 = vector.shape_cast %191 : vector<16x1xf32> to vector<1x16x1xf32>
      %cst_81 = arith.constant dense<0.000000e+00> : vector<1xf32>
      %193 = vector.multi_reduction <add>, %192, %cst_81 [1, 2] : vector<1x16x1xf32> to vector<1xf32>
      %194 = vector.shape_cast %193 : vector<1xf32> to vector<1x1x1xf32>
      %195 = vector.extract %194[0, 0, 0] : f32 from vector<1x1x1xf32>
      %196 = vector.shape_cast %189 : vector<16x1xf32> to vector<1x16x1xf32>
      %cst_82 = arith.constant dense<0.000000e+00> : vector<1xf32>
      %197 = vector.multi_reduction <add>, %196, %cst_82 [1, 2] : vector<1x16x1xf32> to vector<1xf32>
      %198 = vector.shape_cast %197 : vector<1xf32> to vector<1x1x1xf32>
      %199 = vector.extract %198[0, 0, 0] : f32 from vector<1x1x1xf32>
      %200 = arith.divf %195, %199 : f32
      %c0_83 = arith.constant 0 : index
      %c0_84 = arith.constant 0 : index
      %201 = memref.load %arg15[%c0_83, %c0_84] : memref<1x1xf32, #tpu.memory_space<smem>>
      memref.store %200, %arg15[%c0_83, %c0_84] : memref<1x1xf32, #tpu.memory_space<smem>>
    } else {
    }
    return
  }
  func.func @transform_0(%arg0: i32) -> (i32, i32) {
    %c0_i32 = arith.constant 0 : i32
    %c0_i32_0 = arith.constant 0 : i32
    %c0_i32_1 = arith.constant 0 : i32
    return %c0_i32, %c0_i32_0 : i32, i32
  }
  func.func @transform_1(%arg0: i32) -> (i32, i32) {
    %c0_i32 = arith.constant 0 : i32
    %c0_i32_0 = arith.constant 0 : i32
    %c0_i32_1 = arith.constant 0 : i32
    return %c0_i32, %c0_i32_0 : i32, i32
  }
  func.func @transform_2(%arg0: i32) -> (i32, i32) {
    %c0_i32 = arith.constant 0 : i32
    %c0_i32_0 = arith.constant 0 : i32
    %c0_i32_1 = arith.constant 0 : i32
    return %c0_i32, %c0_i32_0 : i32, i32
  }
  func.func @transform_3(%arg0: i32) -> (i32, i32) {
    %c0_i32 = arith.constant 0 : i32
    %c0_i32_0 = arith.constant 0 : i32
    %c0_i32_1 = arith.constant 0 : i32
    return %c0_i32, %c0_i32_0 : i32, i32
  }
  func.func @transform_4(%arg0: i32) -> (i32, i32) {
    %c0_i32 = arith.constant 0 : i32
    %c0_i32_0 = arith.constant 0 : i32
    %c0_i32_1 = arith.constant 0 : i32
    return %c0_i32, %c0_i32_0 : i32, i32
  }
  func.func @transform_5(%arg0: i32) -> (i32, i32, i32) {
    %c0_i32 = arith.constant 0 : i32
    %c0_i32_0 = arith.constant 0 : i32
    %c0_i32_1 = arith.constant 0 : i32
    return %arg0, %c0_i32, %c0_i32_0 : i32, i32, i32
  }
  func.func @transform_6(%arg0: i32) -> (i32, i32, i32) {
    %c0_i32 = arith.constant 0 : i32
    %c0_i32_0 = arith.constant 0 : i32
    %c0_i32_1 = arith.constant 0 : i32
    return %arg0, %c0_i32, %c0_i32_0 : i32, i32, i32
  }
  func.func @transform_7(%arg0: i32) -> (i32, i32, i32) {
    %c0_i32 = arith.constant 0 : i32
    %c0_i32_0 = arith.constant 0 : i32
    %c0_i32_1 = arith.constant 0 : i32
    return %arg0, %c0_i32, %c0_i32_0 : i32, i32, i32
  }
  func.func @transform_8(%arg0: i32) -> (i32, i32, i32) {
    %c0_i32 = arith.constant 0 : i32
    %c0_i32_0 = arith.constant 0 : i32
    %c0_i32_1 = arith.constant 0 : i32
    return %arg0, %c0_i32, %c0_i32_0 : i32, i32, i32
  }
  func.func @transform_9(%arg0: i32) -> (i32, i32, i32) {
    %c0_i32 = arith.constant 0 : i32
    %c0_i32_0 = arith.constant 0 : i32
    %c0_i32_1 = arith.constant 0 : i32
    return %arg0, %c0_i32, %c0_i32_0 : i32, i32, i32
  }
  func.func @transform_10(%arg0: i32) -> (i32, i32, i32) {
    %c0_i32 = arith.constant 0 : i32
    %c0_i32_0 = arith.constant 0 : i32
    %c0_i32_1 = arith.constant 0 : i32
    return %arg0, %c0_i32, %c0_i32_0 : i32, i32, i32
  }
  func.func @transform_11(%arg0: i32) -> (i32, i32) {
    %c0_i32 = arith.constant 0 : i32
    %c0_i32_0 = arith.constant 0 : i32
    %c0_i32_1 = arith.constant 0 : i32
    return %c0_i32, %c0_i32_0 : i32, i32
  }
  func.func @transform_12(%arg0: i32) -> (i32, i32) {
    %c0_i32 = arith.constant 0 : i32
    %c0_i32_0 = arith.constant 0 : i32
    %c0_i32_1 = arith.constant 0 : i32
    return %c0_i32, %c0_i32_0 : i32, i32
  }
  func.func @transform_13(%arg0: i32) -> (i32, i32) {
    %c0_i32 = arith.constant 0 : i32
    %c0_i32_0 = arith.constant 0 : i32
    %c0_i32_1 = arith.constant 0 : i32
    return %c0_i32, %c0_i32_0 : i32, i32
  }
  func.func @transform_14(%arg0: i32) -> (i32, i32) {
    %c0_i32 = arith.constant 0 : i32
    %c0_i32_0 = arith.constant 0 : i32
    %c0_i32_1 = arith.constant 0 : i32
    return %c0_i32, %c0_i32_0 : i32, i32
  }
}

</mosaic_0001>

<bundles_post_ra>
// kernel: tpu_custom_call.1
= control target key start
LH: loop header
LB: loop body
LE: loop exit
PB: predicated region body
PF: predicated region fallthrough
CT: control target
= control target key end

     0   :  { %s4587_s0 = inlined_call_operand.vmem [shape: f32[16,128], index: 0, kind: input, shape index: {}]   ;;  %s4588_s1 = inlined_call_operand.hbm [shape: f32[16,128], index: 1, kind: input, shape index: {}]   ;;  %s4589_s2 = inlined_call_operand.hbm [shape: f32[16,128], index: 2, kind: input, shape index: {}]   ;;  %s4590_s3 = inlined_call_operand.hbm [shape: f32[16,128], index: 3, kind: input, shape index: {}]   ;;  %s4591_s4 = inlined_call_operand.hbm [shape: f32[16,16], index: 4, kind: input, shape index: {}]   ;;  %s4592_s5 = inlined_call_operand.vmem [shape: f32[2,1,128], index: 5, kind: input, shape index: {}]   ;;  %s4593_s6 = inlined_call_operand.hbm [shape: bf16[2,128,384], index: 6, kind: input, shape index: {}]   ;;  %s4594_s7 = inlined_call_operand.hbm [shape: bf16[2,128,128], index: 7, kind: input, shape index: {}]   ;;  %s4595_s8 = inlined_call_operand.vmem [shape: f32[2,1,128], index: 8, kind: input, shape index: {}]   ;;  %s4596_s9 = inlined_call_operand.hbm [shape: bf16[2,128,512], index: 9, kind: input, shape index: {}]   ;;  %s4597_s10 = inlined_call_operand.hbm [shape: bf16[2,256,128], index: 10, kind: input, shape index: {}]   ;;  %s4598_s11 = inlined_call_operand.vmem [shape: f32[1,128], index: 11, kind: input, shape index: {}]   ;;  %s4599_s12 = inlined_call_operand.hbm [shape: bf16[128,256], index: 12, kind: input, shape index: {}]   ;;  %s4600_s13 = inlined_call_operand.vmem [shape: s32[16,1], index: 13, kind: input, shape index: {}]   ;;  %s4601_s14 = inlined_call_operand.hbm [shape: f32[1,1], index: 14, kind: output, shape index: {}]  }
   0x1   :  { %4619 = sst [smem:[#allocation27_spill]] %s4587_s0 }
   0x2   :  { %4620 = sst [smem:[#allocation28_spill]] %s4588_s1 }
   0x3   :  { %4621 = sst [smem:[#allocation29_spill]] %s4589_s2 }
   0x4   :  { %4622 = sst [smem:[#allocation30_spill]] %s4592_s5 }
   0x5   :  { %4623 = sst [smem:[#allocation31_spill]] %s4593_s6 }
   0x6   :  { %4624 = sst [smem:[#allocation32_spill]] %s4595_s8 }
   0x7   :  { %4625 = sst [smem:[#allocation33_spill]] %s4598_s11 }
   0x8   :  { %4626 = sst [smem:[#allocation34_spill]] %s4600_s13 }
   0x9   :  { %4627 = sst [smem:[#allocation35_spill]] %s4601_s14 }
   0xa   :  { %19 = vsyncpa [#allocation5], 0 }
   0xb   :  { %20 = vsyncpa [#allocation8], 0 }
   0xc   :  { %21 = vsyncpa [#allocation11], 0 }
   0xd   :  { %22 = vsyncpa [#allocation6], 0  ;;  %s3988_s29 = smov 0   ;;  %s3990_s30 = smov 0  }
   0xe   :  { %s3992_s15 = smov 0   ;;  %s3994_s16 = smov 0  }
   0xf LB: > { %4628 = sst [smem:[#allocation24_spill]] %s3879_s15  ;;  %s4007_s17 = sadd.s32 4294967295, %s3883_s16   ;;  %s3883_s16 = sphi %s3994_s16, %s4668_s16   ;;  %s3879_s15 = sphi %s3992_s15, %s4670_s15   ;;  %s3875_s30 = sphi %s3990_s30, %s4672_s30   ;;  %s3871_s29 = sphi %s3988_s29, %s4671_s29  }
  0x10   : > { %p179_p0 = scmp.ne.s32.totalorder %s3875_s30, %s3871_s29  ;;  %p4610_p1 = scmp.eq.s32.totalorder %s4007_s17, 0 }
  0x11   : > { %p2900_p2 = scmp.ge.s32.totalorder %s3883_s16, 1  ;;  %p378_p3 = scmp.lt.s32.totalorder %s3883_s16, 3 }
  0x12   : > { %p4016_p5 = por %p4610_p1, %p179_p0  ;;  %s3885_s20 = smov [#allocation4]  }
  0x13   : > { %p4020_p6 = pnand %p2900_p2, %p378_p3  ;;  %s393_s21 = sshll.u32 %s3885_s20, 4  ;;  %s394_s21 = int_to_ptr.vmem [resolvable:$true] %s393_s21 }
  0x14   : > { %s4629_s18 = scalar_select %p4016_p5, 1, 0 }
  0x15   : > { %s4630_s19 = scalar_select %p4020_p6, 1, 0 }
  0x16   : > { %p3273_p7 = pneg %p4020_p6  ;;  %s4033_s23 = sadd.s32 1, %s3883_s16  }
  0x17   : > { %4632 = sst [smem:[#allocation25_spill]] %s4033_s23  ;;  %s166_s24 = sadd.s32 1, %s3879_s15 }
  0x18   : > { %p4028_p8 = pnand %p3273_p7, %p4610_p1  ;;  %s163_s25 = ssub.s32 %s3883_s16, %s4033_s23 }
  0x19   : > { %s3588_s27 = scalar_lea.vmem %s394_s21, 256  ;;  %p3596_p13 = scmp.lt.s32.totalorder %s394_s21, %s394_s21 }
  0x1a   : > { %s4631_s22 = scalar_select %p4028_p8, 1, 0 }
  0x1b   : > { %p4040_p9 = pneg %p4028_p8  ;;  %p3589_p10 = scmp.ne.s32.totalorder %s394_s21, %s3588_s27 }
  0x1c   : > { %p3597_p0 = scmp.lt.s32.totalorder %s3588_s27, %s3588_s27 }
  0x1d   : > { %s4633_s26 = scalar_select %p4040_p9, 1, 0 }
  0x1e   : > { %p3591_p11 = pnand %p3589_p10, %p4040_p9  ;;  %p3598_p2 = por %p3597_p0, %p3596_p13 }
  0x20   : > { %p3592_p12 = pneg %p3591_p11 }
  0x22   : > { %p3599_p3 = pnand %p3598_p2, %p3592_p12 }
  0x24   : > { %3602 = shalt.err (!%p3599_p3)
}
  0x25   : > { %s4606_s28 = smov 128   ;;  %s4608_s29 = smov 8  }
  0x26   : > { %s4634_s1 = sld [smem:[#allocation28_spill]]  ;;  %p164_p7 = scmp.eq.s32.totalorder %s163_s25, 0 }
  0x27   : > { %p173_p10 = scmp.ne.s32.totalorder %s3879_s15, %s3875_s30  ;;  %p174_p11 = scmp.eq.s32.totalorder %s3883_s16, 0 }
  0x28   : > { %p3307_p12 = scmp.lt.s32.totalorder %s3883_s16, 2  ;;  %s471_s14 = sand.u32 1, %s3883_s16  }
  0x29   : > { %s4059_s23 = scalar_select %p164_p7, %s3879_s15, %s166_s24  }
  0x2a   : > { %p175_p13 = por %p174_p11, %p173_p10  ;;  %s4063_s11 = sand.u32 1, %s3879_s15  }
  0x2b   : > { %4635 = sst [smem:[#allocation26_spill]] %s4059_s23  ;;  %s3232_s13 = smul.u32 192, %s4063_s11 }
  0x2c   : > { %3276 = dma.hbm_to_vmem [thread:$0]  (!%p4028_p8), %s4634_s1, 256, %s394_s21, [#allocation5], %s4606_s28, %s4606_s28, %s4608_s29  }
  0x2d   : > { %p4066_p0 = pnand %p3307_p12, %p175_p13  ;;  %s3233_s8 = smul.u32 3072, %s3883_s16 }
  0x2e   : > { %s4637_s6 = sld [smem:[#allocation31_spill]]  ;;  %s475_s24 = scalar_lea.vmem [#allocation12], %s3232_s13 }
  0x2f   : > { %s482_s27 = sshll.u32 %s475_s24, 4  ;;  %s4078_s28 = scalar_lea.sflag [#allocation5], %s471_s14  ;;  %s4076_s27 = int_to_ptr.vmem [resolvable:$true] %s482_s27 }
  0x30   : > { %p4084_p3 = pneg %p4066_p0 }
  0x34   : > { %s4074_s25 = scalar_lea.hbm %s4637_s6, %s3233_s8  ;;  %s3608_s13 = scalar_lea.hbm %s4637_s6, 6144 }
  0x35   : > { %s3603_s29 = scalar_lea.hbm %s4074_s25, 3072  ;;  %p3609_p11 = scmp.lt.s32.totalorder %s4074_s25, %s4637_s6 }
  0x36   : > { %p3604_p2 = scmp.ne.s32.totalorder %s4074_s25, %s3603_s29  ;;  %p3610_p12 = scmp.lt.s32.totalorder %s3608_s13, %s3603_s29 }
  0x38   : > { %p3606_p7 = pnand %p4084_p3, %p3604_p2  ;;  %p3611_p13 = por %p3610_p12, %p3609_p11 }
  0x3a   : > { %p3607_p10 = pneg %p3606_p7 }
  0x3c   : > { %p3612_p4 = pnand %p3611_p13, %p3607_p10 }
  0x3e   : > { %3615 = shalt.err (!%p3612_p4)
}
  0x3f   : > { %s3616_s14 = scalar_lea.vmem %s4076_s27, 3072  ;;  %s3888_s23 = smov [#allocation12]  }
  0x40   : > { %p3617_p1 = scmp.ne.s32.totalorder %s4076_s27, %s3616_s14  ;;  %s3621_s8 = sshll.u32 %s3888_s23, 4  ;;  %s3622_s8 = int_to_ptr.vmem [resolvable:$false] %s3621_s8 }
  0x41   : > { %s3623_s20 = scalar_lea.vmem %s3622_s8, 6144  ;;  %p3624_p5 = scmp.lt.s32.totalorder %s4076_s27, %s3622_s8 }
  0x42   : > { %p3619_p2 = pnand %p3617_p1, %p4084_p3  ;;  %p3625_p6 = scmp.lt.s32.totalorder %s3623_s20, %s3616_s14 }
  0x44   : > { %p3620_p7 = pneg %p3619_p2  ;;  %p3626_p8 = por %p3625_p6, %p3624_p5 }
  0x46   : > { %p3627_p9 = pnand %p3626_p8, %p3620_p7 }
  0x48   : > { %3630 = shalt.err (!%p3627_p9)
}
  0x49   : > { %s3889_s29 = smov 192   ;;  %s3890_s13 = smov 12  }
  0x4a   : > { %3292 = dma.hbm_to_vmem [thread:$0]  (!%p4066_p0), %s4074_s25, 3072, %s4076_s27, %s4078_s28, %s3889_s29, %s3889_s29, %s3890_s13  }
  0x4b   : > { %s2908_s21 = sshll.u32 %s4063_s11, 6  ;;  %s3891_s23 = smov [#allocation7]  }
  0x4c   : > { %s406_s24 = sshll.u32 %s3891_s23, 4  ;;  %s3061_s8 = sshll.u32 %s3883_s16, 10  ;;  %s407_s24 = int_to_ptr.vmem [resolvable:$true] %s406_s24 }
  0x4d   : > { %s3642_s14 = scalar_lea.vmem %s407_s24, 256  ;;  %p4639_p4 = scmp.ne.s32.totalorder %s4633_s26, 0 }
  0x4e   : > { %p3643_p1 = scmp.ne.s32.totalorder %s407_s24, %s3642_s14  ;;  %p3650_p8 = scmp.lt.s32.totalorder %s407_s24, %s407_s24 }
  0x4f   : > { %p3651_p9 = scmp.lt.s32.totalorder %s3642_s14, %s3642_s14 }
  0x50   : > { %p3645_p5 = pnand %p3643_p1, %p4639_p4 }
  0x51   : > { %p3652_p10 = por %p3651_p9, %p3650_p8 }
  0x52   : > { %p3646_p6 = pneg %p3645_p5 }
  0x54   : > { %p3653_p11 = pnand %p3652_p10, %p3646_p6 }
  0x56   : > { %3656 = shalt.err (!%p3653_p11)
}
  0x57   : > { %p4640_p12 = scmp.ne.s32.totalorder %s4631_s22, 0  ;;  %s4641_s20 = smov 8  }
  0x58   : > { %s4642_s6 = smov 128   ;;  %s4643_s2 = sld [smem:[#allocation29_spill]] }
  0x59   : > { %s4122_s23 = scalar_lea.hbm %s4594_s7, %s3061_s8  ;;  %s496_s14 = scalar_lea.vmem [#allocation13], %s2908_s21 }
  0x5a   : > { %s503_s15 = sshll.u32 %s496_s14, 4  ;;  %s3657_s5 = scalar_lea.hbm %s4122_s23, 1024  ;;  %s4124_s15 = int_to_ptr.vmem [resolvable:$true] %s503_s15 }
  0x5b   : > { %p3658_p13 = scmp.ne.s32.totalorder %s4122_s23, %s3657_s5  ;;  %p3663_p1 = scmp.lt.s32.totalorder %s4122_s23, %s4594_s7 }
  0x5d   : > { %p3660_p2 = pnand %p3658_p13, %p4084_p3 }
  0x5e   : > { %3279 = dma.hbm_to_vmem [thread:$0]  (!%p4640_p12), %s4643_s2, 256, %s407_s24, [#allocation8], %s4642_s6, %s4642_s6, %s4641_s20  }
  0x5f   : > { %p3661_p7 = pneg %p3660_p2  ;;  %s3662_s24 = scalar_lea.hbm %s4594_s7, 2048 }
  0x60   : > { %p3664_p5 = scmp.lt.s32.totalorder %s3662_s24, %s3657_s5 }
  0x62   : > { %p3665_p6 = por %p3664_p5, %p3663_p1 }
  0x64   : > { %p3666_p8 = pnand %p3665_p6, %p3661_p7 }
  0x66   : > { %3669 = shalt.err (!%p3666_p8)
}
  0x67   : > { %s3670_s21 = scalar_lea.vmem %s4124_s15, 1024  ;;  %s3892_s8 = smov [#allocation13]  }
  0x68   : > { %p3671_p9 = scmp.ne.s32.totalorder %s4124_s15, %s3670_s21  ;;  %s3675_s13 = sshll.u32 %s3892_s8, 4  ;;  %s3676_s13 = int_to_ptr.vmem [resolvable:$false] %s3675_s13 }
  0x69   : > { %s3677_s14 = scalar_lea.vmem %s3676_s13, 2048  ;;  %p3678_p13 = scmp.lt.s32.totalorder %s4124_s15, %s3676_s13 }
  0x6a   : > { %p3673_p10 = pnand %p3671_p9, %p4084_p3  ;;  %p3679_p2 = scmp.lt.s32.totalorder %s3677_s14, %s3670_s21 }
  0x6c   : > { %p3674_p11 = pneg %p3673_p10  ;;  %p3680_p12 = por %p3679_p2, %p3678_p13 }
  0x6e   : > { %p3681_p4 = pnand %p3680_p12, %p3674_p11 }
  0x70   : > { %3684 = shalt.err (!%p3681_p4)
}
  0x71   : > { %s4618_s2 = smov 64   ;;  %s3894_s5 = smov 4  }
  0x72   : > { %3295 = dma.hbm_to_vmem [thread:$0]  (!%p4066_p0), %s4122_s23, 1024, %s4124_s15, %s4078_s28, %s4618_s2, %s4618_s2, %s3894_s5  }
  0x73   : > { %s3895_s25 = smov [#allocation9]   ;;  %s2911_s24 = sshll.u32 %s4063_s11, 8 }
  0x74   : > { %s419_s27 = sshll.u32 %s3895_s25, 4  ;;  %p4644_p4 = scmp.ne.s32.totalorder %s4633_s26, 0  ;;  %s420_s27 = int_to_ptr.vmem [resolvable:$true] %s419_s27 }
  0x75   : > { %s3696_s29 = scalar_lea.vmem %s420_s27, 256  ;;  %p3704_p5 = scmp.lt.s32.totalorder %s420_s27, %s420_s27 }
  0x76   : > { %p3697_p12 = scmp.ne.s32.totalorder %s420_s27, %s3696_s29  ;;  %p3705_p6 = scmp.lt.s32.totalorder %s3696_s29, %s3696_s29 }
  0x78   : > { %p3699_p7 = pnand %p3697_p12, %p4644_p4  ;;  %p3706_p8 = por %p3705_p6, %p3704_p5 }
  0x7a   : > { %p3700_p1 = pneg %p3699_p7 }
  0x7c   : > { %p3707_p9 = pnand %p3706_p8, %p3700_p1 }
  0x7e   : > { %3710 = shalt.err (!%p3707_p9)
}
  0x7f   : > { %p4645_p10 = scmp.ne.s32.totalorder %s4631_s22, 0  ;;  %s3062_s21 = sshll.u32 %s3883_s16, 12 }
  0x80   : > { %s523_s8 = scalar_lea.vmem [#allocation14], %s2911_s24  ;;  %s4165_s29 = scalar_lea.hbm %s4596_s9, %s3062_s21 }
  0x81   : > { %3282 = dma.hbm_to_vmem [thread:$0]  (!%p4645_p10), %s4590_s3, 256, %s420_s27, [#allocation8], %s4642_s6, %s4642_s6, %s4641_s20  }
  0x82   : > { %s530_s13 = sshll.u32 %s523_s8, 4  ;;  %s3711_s2 = scalar_lea.hbm %s4165_s29, 4096  ;;  %s4167_s13 = int_to_ptr.vmem [resolvable:$true] %s530_s13 }
  0x83   : > { %p3712_p11 = scmp.ne.s32.totalorder %s4165_s29, %s3711_s2  ;;  %s3716_s24 = scalar_lea.hbm %s4596_s9, 8192 }
  0x84   : > { %p3717_p12 = scmp.lt.s32.totalorder %s4165_s29, %s4596_s9  ;;  %p3718_p7 = scmp.lt.s32.totalorder %s3716_s24, %s3711_s2 }
  0x85   : > { %p3714_p13 = pnand %p3712_p11, %p4084_p3 }
  0x86   : > { %p3719_p1 = por %p3718_p7, %p3717_p12 }
  0x87   : > { %p3715_p2 = pneg %p3714_p13 }
  0x89   : > { %p3720_p5 = pnand %p3719_p1, %p3715_p2 }
  0x8b   : > { %3723 = shalt.err (!%p3720_p5)
}
  0x8c   : > { %s3724_s21 = scalar_lea.vmem %s4167_s13, 4096  ;;  %s3896_s14 = smov [#allocation14]  }
  0x8d   : > { %p3725_p6 = scmp.ne.s32.totalorder %s4167_s13, %s3724_s21  ;;  %s3729_s25 = sshll.u32 %s3896_s14, 4  ;;  %s3730_s25 = int_to_ptr.vmem [resolvable:$false] %s3729_s25 }
  0x8e   : > { %s3731_s15 = scalar_lea.vmem %s3730_s25, 8192  ;;  %p3732_p11 = scmp.lt.s32.totalorder %s4167_s13, %s3730_s25 }
  0x8f   : > { %p3727_p8 = pnand %p3725_p6, %p4084_p3  ;;  %p3733_p13 = scmp.lt.s32.totalorder %s3731_s15, %s3724_s21 }
  0x91   : > { %p3728_p9 = pneg %p3727_p8  ;;  %p3734_p10 = por %p3733_p13, %p3732_p11 }
  0x93   : > { %p3735_p4 = pnand %p3734_p10, %p3728_p9 }
  0x95   : > { %3738 = shalt.err (!%p3735_p4)
}
  0x96   : > { %s3897_s2 = smov 256   ;;  %s3898_s27 = smov 16  }
  0x97   : > { %3298 = dma.hbm_to_vmem [thread:$0]  (!%p4066_p0), %s4165_s29, 4096, %s4167_s13, %s4078_s28, %s3897_s2, %s3897_s2, %s3898_s27  }
  0x98   : > { %s3899_s24 = smov [#allocation10]   ;;  %s3900_s8 = smov [#allocation16]  }
  0x99   : > { %s432_s23 = sshll.u32 %s3899_s24, 4  ;;  %s448_s14 = sshll.u32 %s3900_s8, 4  ;;  %s433_s23 = int_to_ptr.vmem [resolvable:$true] %s432_s23  ;;  %s449_s14 = int_to_ptr.vmem [resolvable:$true] %s448_s14 }
  0x9a   : > { %s3750_s25 = scalar_lea.vmem %s433_s23, 256  ;;  %p4646_p12 = scmp.ne.s32.totalorder %s4633_s26, 0 }
  0x9b   : > { %p3751_p2 = scmp.ne.s32.totalorder %s433_s23, %s3750_s25  ;;  %p3758_p7 = scmp.lt.s32.totalorder %s433_s23, %s433_s23 }
  0x9c   : > { %p3759_p1 = scmp.lt.s32.totalorder %s3750_s25, %s3750_s25 }
  0x9d   : > { %p3753_p10 = pnand %p3751_p2, %p4646_p12 }
  0x9e   : > { %p3760_p5 = por %p3759_p1, %p3758_p7 }
  0x9f   : > { %p3754_p4 = pneg %p3753_p10 }
  0xa1   : > { %p3761_p6 = pnand %p3760_p5, %p3754_p4 }
  0xa3   : > { %3764 = shalt.err (!%p3761_p6)
}
  0xa4   : > { %p4647_p8 = scmp.ne.s32.totalorder %s4631_s22, 0  ;;  %s3776_s21 = scalar_lea.vmem %s449_s14, 2048 }
  0xa5   : > { %p3777_p9 = scmp.ne.s32.totalorder %s449_s14, %s3776_s21  ;;  %p3784_p2 = scmp.lt.s32.totalorder %s449_s14, %s449_s14 }
  0xa6   : > { %3285 = dma.hbm_to_vmem [thread:$0]  (!%p4647_p8), %s4591_s4, 256, %s433_s23, [#allocation11], %s4642_s6, %s4642_s6, %s4641_s20  }
  0xa7   : > { %p3779_p11 = pnand %p3777_p9, %p4646_p12  ;;  %p3785_p10 = scmp.lt.s32.totalorder %s3776_s21, %s3776_s21 }
  0xa9   : > { %p3780_p13 = pneg %p3779_p11  ;;  %p3786_p7 = por %p3785_p10, %p3784_p2 }
  0xab   : > { %p3787_p4 = pnand %p3786_p7, %p3780_p13 }
  0xad   : > { %3790 = shalt.err (!%p3787_p4)
}
  0xae   : > { %3288 = dma.hbm_to_vmem [thread:$0]  (!%p4647_p8), %s4599_s12, 2048, %s449_s14, [#allocation8], %s4642_s6, %s4642_s6, %s4641_s20  }
  0xaf   : > { %s2914_s26 = sshll.u32 %s4063_s11, 7  ;;  %s3063_s27 = sshll.u32 %s3883_s16, 11 }
  0xb0   : > { %s4215_s8 = scalar_lea.hbm %s4597_s10, %s3063_s27  ;;  %s544_s22 = scalar_lea.vmem [#allocation15], %s2914_s26 }
  0xb1   : > { %s551_s25 = sshll.u32 %s544_s22, 4  ;;  %s3791_s13 = scalar_lea.hbm %s4215_s8, 2048  ;;  %s552_s25 = int_to_ptr.vmem [resolvable:$true] %s551_s25 }
  0xb2   : > { %p3792_p12 = scmp.ne.s32.totalorder %s4215_s8, %s3791_s13  ;;  %s3796_s11 = scalar_lea.hbm %s4597_s10, 4096 }
  0xb3   : > { %p3797_p6 = scmp.lt.s32.totalorder %s4215_s8, %s4597_s10  ;;  %p3798_p8 = scmp.lt.s32.totalorder %s3796_s11, %s3791_s13 }
  0xb4   : > { %p3794_p1 = pnand %p3792_p12, %p4084_p3 }
  0xb5   : > { %p3799_p9 = por %p3798_p8, %p3797_p6 }
  0xb6   : > { %p3795_p5 = pneg %p3794_p1 }
  0xb8   : > { %p3800_p11 = pnand %p3799_p9, %p3795_p5 }
  0xba   : > { %3803 = shalt.err (!%p3800_p11)
}
  0xbb   : > { %s3804_s14 = scalar_lea.vmem %s552_s25, 2048  ;;  %s3901_s21 = smov [#allocation15]  }
  0xbc   : > { %p3805_p13 = scmp.ne.s32.totalorder %s552_s25, %s3804_s14  ;;  %s3809_s15 = sshll.u32 %s3901_s21, 4  ;;  %s3810_s15 = int_to_ptr.vmem [resolvable:$false] %s3809_s15 }
  0xbd   : > { %s3811_s2 = scalar_lea.vmem %s3810_s15, 4096  ;;  %p3812_p7 = scmp.lt.s32.totalorder %s552_s25, %s3810_s15 }
  0xbe   : > { %p3807_p2 = pnand %p3805_p13, %p4084_p3  ;;  %p3813_p4 = scmp.lt.s32.totalorder %s3811_s2, %s3804_s14 }
  0xc0   : > { %p3808_p10 = pneg %p3807_p2  ;;  %p3814_p12 = por %p3813_p4, %p3812_p7 }
  0xc2   : > { %p3815_p1 = pnand %p3814_p12, %p3808_p10 }
  0xc4   : > { %3818 = shalt.err (!%p3815_p1)
}
  0xc5   : > { %s4648_s26 = smov 64   ;;  %p4649_p3 = scmp.ne.s32.totalorder %s4630_s19, 0 }
  0xc6   : > { %3301 = dma.hbm_to_vmem [thread:$0]  (!%p4066_p0), %s4215_s8, 2048, %s552_s25, %s4078_s28, %s4648_s26, %s4648_s26, %s3894_s5  }
  0xc7   : > { %563 = sbr.rel (%p4649_p3) target bundleno = 4504 (0x1198), region = 76  ;;  %p4650_p5 = scmp.eq.s32.totalorder (!%p4649_p3), %s4007_s17, 0 }
  0xcc   : > { %3846 = dma.done.wait (%p4650_p5), [#allocation5], 256   ;;  %p4651_p6 = pmov %p4650_p5 }
  0xcd   : > { %p4652_p8 = pmov %p4650_p5 }
  0xce   : > { %3848 = vsyncadd (%p4651_p6), [#allocation5], 4294967040 }
  0xcf   : > { %3850 = dma.done.wait (%p4652_p8), [#allocation8], 512   ;;  %p4653_p9 = pmov %p4650_p5 }
  0xd0   : > { %p4654_p11 = pmov %p4650_p5 }
  0xd1   : > { %3852 = vsyncadd (%p4653_p9), [#allocation8], 4294966784 }
  0xd2   : > { %3854 = dma.done.wait (%p4654_p11), [#allocation11], 256   ;;  %p4655_p0 = pmov %p4650_p5 }
  0xd3   : > { %s581_s0 = sand.u32 1, %s4007_s17   ;;  %s583_s1 = sand.u32 1, %s3875_s30  }
  0xd4   : > { %3856 = vsyncadd (%p4655_p0), [#allocation11], 4294967040  ;;  %s3234_s19 = smul.u32 192, %s583_s1  ;;  %s582_s28 = scalar_lea.sflag [#allocation5], %s581_s0 }
  0xd5   : > { %p4656_p13 = scmp.ne.s32.totalorder %s4629_s18, 0 }
  0xd6   : > { %s4253_s5 = scalar_lea.vmem [#allocation12], %s3234_s19 }
  0xd7   : > { %3858 = dma.done.wait (%p4656_p13), %s582_s28, 10240  }
  0xd8   : > { %3860 = vsyncadd (%p4656_p13), %s582_s28, 4294957056  ;;  %s2922_s27 = sshll.u32 %s583_s1, 6  ;;  %s2923_s24 = sshll.u32 %s583_s1, 8 }
  0xd9   : > { %s2924_s23 = sshll.u32 %s583_s1, 7  ;;  %s4259_s8 = scalar_lea.vmem [#allocation13], %s2922_s27 }
  0xda   : > { %s4261_s22 = scalar_lea.vmem [#allocation14], %s2923_s24  ;;  %s4263_s25 = scalar_lea.vmem [#allocation15], %s2924_s23 }
  0xdb   : > { %p4657_p2 = pmov %p4655_p0 }
  0xdc   : > { %p4658_p10 = pmov %p4655_p0 }
  0xdd   : > { %3862 = dma.done.wait (%p4657_p2), [#allocation8], 2048  }
  0xde   : > { %3864 = vsyncadd (%p4658_p10), [#allocation8], 4294965248  ;;  %p677_p7 = scmp.lt.s32.totalorder %s4007_s17, 1  ;;  %s4659_s6 = sld [smem:[#allocation30_spill]] }
  0xdf   : > { %s4660_s14 = sld [smem:[#allocation32_spill]]  ;;  %p4661_p4 = scmp.ne.s32.totalorder %s4007_s17, 0 }
  0xe0   : > { %s4271_s18 = scalar_select %p677_p7, %s4007_s17, 1 }
  0xe1   : > { %687 = sbr.rel (%p4661_p4) target bundleno = 233 (0xe9), region = 116  ;;  %s4662_s26 = sld [smem:[#allocation27_spill]] (!%p4661_p4) }
  0xe4   : > { %s679_s11 = scalar_lea.vmem %s4659_s6, %s4271_s18 }
  0xe5   : > { %s682_s21 = scalar_lea.vmem %s4660_s14, %s4271_s18 }
  0xe7   : > { %v688_v0 = vld [vmem:[%s4662_s26] sm:$0xff]  ;;  %v689_v1 = vld [vmem:[%s4662_s26 + $0x8] sm:$0xff] }
  0xe8   : > { %690 = vst [vmem:[#allocation2] sm:$0xff] %v688_v0  ;;  %691 = vst [vmem:[#allocation2 + $0x8] sm:$0xff] %v689_v1 }
  0xe9 PF: > { %v3371_v5 = vld [vmem:[%s4253_s5 + $0xac] ss:$12 sps:$4 sm:$0xff]   ;;  %v3902_v6 = vmov 0.0   ;;  %v3373_v7 = vld [vmem:[%s4253_s5 + $0xa8] ss:$12 sps:$4 sm:$0xff]   ;;  %v3903_v28 = vmov 0  }
  0xea   : > { %3136 = vmatprep.subr.bf16.mxu1 %v3902_v6  ;;  %v3374_v8 = vld [vmem:[%s4253_s5 + $0xb0] ss:$12 sps:$4 sm:$0xff]   ;;  %879 = vmatprep.subr.bf16.mxu0 %v3371_v5  ;;  %v3375_v10 = vld [vmem:[%s4253_s5 + $0x94] ss:$12 sps:$4 sm:$0xff]   ;;  %v3378_v12 = vld [vmem:[%s4253_s5 + $0x98] ss:$12 sps:$4 sm:$0xff]  }
  0xeb   : > { %880 = vmatpush1.bf16.msra.mxu0 %v3373_v7  ;;  %3137 = vmatpush3.bf16.msra.mxu1 %v3374_v8  ;;  %v3377_v11 = vld [vmem:[%s4253_s5 + $0x90] ss:$12 sps:$4 sm:$0xff]   ;;  %v3381_v14 = vld [vmem:[%s4253_s5 + $0x78] ss:$12 sps:$4 sm:$0xff]   ;;  %v3382_v15 = vld [vmem:[%s4253_s5 + $0x80] ss:$12 sps:$4 sm:$0xff]  }
  0xec   : > { %3138 = vmatprep.subr.bf16.mxu1 %v3902_v6  ;;  %881 = vmatprep.subr.bf16.mxu0 %v3375_v10  ;;  %v3379_v13 = vld [vmem:[%s4253_s5 + $0x7c] ss:$12 sps:$4 sm:$0xff]   ;;  %v3383_v16 = vld [vmem:[%s4253_s5 + $0x64] ss:$12 sps:$4 sm:$0xff]   ;;  %v3385_v17 = vld [vmem:[%s4253_s5 + $0x60] ss:$12 sps:$4 sm:$0xff]  }
  0xed   : > { %v3386_v18 = vld [vmem:[%s4253_s5 + $0x68] ss:$12 sps:$4 sm:$0xff]   ;;  %v3387_v19 = vld [vmem:[%s4253_s5 + $0x4c] ss:$12 sps:$4 sm:$0xff]   ;;  %v3390_v21 = vld [vmem:[%s4253_s5 + $0x50] ss:$12 sps:$4 sm:$0xff]   ;;  %911 = vmatprep.mubr.bf16.mxu0 %v3903_v28 }
  0xee   : > { %v3389_v20 = vld [vmem:[%s4253_s5 + $0x48] ss:$12 sps:$4 sm:$0xff]   ;;  %v3393_v23 = vld [vmem:[%s4253_s5 + $0x30] ss:$12 sps:$4 sm:$0xff]   ;;  %v3394_v24 = vld [vmem:[%s4253_s5 + $0x38] ss:$12 sps:$4 sm:$0xff]  }
  0xef   : > { %v4289_v2 = vld [vmem:[#allocation2] sm:$0xff]  ;;  %v4291_v3 = vld [vmem:[#allocation2 + $0x8] sm:$0xff]  ;;  %882 = vmatpush1.bf16.msra.mxu0 %v3377_v11  ;;  %3139 = vmatpush3.bf16.msra.mxu1 %v3378_v12  ;;  %vm3904_vm0 = vmmov 0   ;;  %s3905_s27 = smov 112   ;;  %s3906_s24 = smov 16   ;;  %v965_v56 = vld [vmem:[#allocation7] sm:$0xff] }
  0xf0   : > { %v695_v4 = vmul.f32 %v4289_v2, %v4289_v2  ;;  %v696_v9 = vmul.f32 %v4291_v3, %v4291_v3  ;;  %3140 = vmatprep.subr.bf16.mxu1 %v3902_v6  ;;  %883 = vmatprep.subr.bf16.mxu0 %v3379_v13  ;;  %v3391_v22 = vld [vmem:[%s4253_s5 + $0x34] ss:$12 sps:$4 sm:$0xff]   ;;  %v3395_v25 = vld [vmem:[%s4253_s5 + $0x1c] ss:$12 sps:$4 sm:$0xff]   ;;  %v3397_v26 = vld [vmem:[%s4253_s5 + $0x18] ss:$12 sps:$4 sm:$0xff]  }
  0xf1   : > { %v3398_v27 = vld [vmem:[%s4253_s5 + $0x20] ss:$12 sps:$4 sm:$0xff]   ;;  %3152 = vmatprep.mubr.msk.bf16.mxu1 %vm3904_vm0, %v3902_v6  ;;  %v3399_v29 = vld [vmem:[%s4253_s5 + $0x4] ss:$12 sps:$4 sm:$0xff]   ;;  %v3402_v31 = vld [vmem:[%s4253_s5 + $0x8] ss:$12 sps:$4 sm:$0xff]  }
  0xf2   : > { %697 = vadd.xlane.f32.xlu0 %v695_v4  ;;  %v3401_v30 = vld [vmem:[%s4253_s5] ss:$12 sps:$4 sm:$0xff]   ;;  %s3907_s23 = smov 96   ;;  %vm1007_vm1 = vcmask 261120   ;;  %vm1095_vm2 = vcmask 130048   ;;  %s3908_s13 = smov 64  }
  0xf3   : > { %884 = vmatpush1.bf16.msra.mxu0 %v3381_v14  ;;  %3141 = vmatpush3.bf16.msra.mxu1 %v3382_v15  ;;  %v2927_v41 = vld [vmem:[%s679_s11] ss:$0 sm:$0xff]  ;;  %v964_v5 = vld [vmem:[#allocation4 + $0x8] sm:$0xff]  ;;  %s3909_s29 = smov 32   ;;  %vm1411_vm3 = vcmask 523520   ;;  %vm1622_vm4 = vcmask 785920  }
  0xf4   : > { %3142 = vmatprep.subr.bf16.mxu1 %v3902_v6  ;;  %885 = vmatprep.subr.bf16.mxu0 %v3383_v16  ;;  %v963_v55 = vld [vmem:[#allocation4] sm:$0xff]  ;;  %v968_v7 = vld [vmem:[#allocation9 + $0x8] sm:$0xff]  ;;  %vm1833_vm5 = vcmask 1048320   ;;  %p3037_p12 = scmp.ne.s32.totalorder %s4007_s17, 1 }
  0xf5   : > { %v967_v58 = vld [vmem:[#allocation9] sm:$0xff]  ;;  %s4665_s11 = sld [smem:[#allocation34_spill]] (!%p3037_p12) }
  0xf6   : > { %699 = vadd.xlane.f32.xlu0 %v696_v9  ;;  %s4666_s14 = sld [smem:[#allocation33_spill]] (!%p3037_p12) }
  0xf7   : > { %886 = vmatpush1.bf16.msra.mxu0 %v3385_v17  ;;  %3143 = vmatpush3.bf16.msra.mxu1 %v3386_v18 }
  0xf8   : > { %887 = vmatprep.subr.bf16.mxu0 %v3387_v19  ;;  %3144 = vmatprep.subr.bf16.mxu1 %v3902_v6 }
  0xfb   : > { %888 = vmatpush1.bf16.msra.mxu0 %v3389_v20  ;;  %3145 = vmatpush3.bf16.msra.mxu1 %v3390_v21 }
  0xfc   : > { %889 = vmatprep.subr.bf16.mxu0 %v3391_v22  ;;  %3146 = vmatprep.subr.bf16.mxu1 %v3902_v6 }
  0xff   : > { %890 = vmatpush1.bf16.msra.mxu0 %v3393_v23  ;;  %3147 = vmatpush3.bf16.msra.mxu1 %v3394_v24 }
 0x100   : > { %891 = vmatprep.subr.bf16.mxu0 %v3395_v25  ;;  %3148 = vmatprep.subr.bf16.mxu1 %v3902_v6 }
 0x103   : > { %892 = vmatpush1.bf16.msra.mxu0 %v3397_v26  ;;  %3149 = vmatpush3.bf16.msra.mxu1 %v3398_v27 }
 0x104   : > { %893 = vmatprep.subr.bf16.mxu0 %v3399_v29  ;;  %3150 = vmatprep.subr.bf16.mxu1 %v3902_v6 }
 0x107   : > { %894 = vmatpush1.bf16.msra.mxu0 %v3401_v30  ;;  %3151 = vmatpush3.bf16.msra.mxu1 %v3402_v31  ;;  %v4381_v30 = vld [vmem:[#allocation10 + $0x8] sm:$0xff] }
 0x17b   : > { %v698_v32 = vpop.xlane.xlu0 %697 }
 0x17c   : > { %v702_v33 = vmul.f32 0.0078125, %v698_v32  ;;  %v4383_v32 = vld [vmem:[#allocation10] sm:$0xff] }
 0x17e   : > { %v704_v34 = vadd.f32 1e-06, %v702_v33 }
 0x17f   : > { %v700_v35 = vpop.xlane.xlu0 %699 }
 0x180   : > { %3475 = vrsqrt.f32 %v704_v34  ;;  %v703_v36 = vmul.f32 0.0078125, %v700_v35 }
 0x182   : > { %v705_v37 = vadd.f32 1e-06, %v703_v36 }
 0x184   : > { %3477 = vrsqrt.f32 %v705_v37 }
 0x18d   : > { %v3476_v38 = vpop.eup %3475 }
 0x18e   : > { %v708_v39 = vmul.f32 %v3476_v38, %v4289_v2  ;;  %v966_v2 = vld [vmem:[#allocation7 + $0x8] sm:$0xff] }
 0x190   : > { %v716_v43 = vmul.f32 %v2927_v41, %v708_v39 }
 0x191   : > { %v3478_v40 = vpop.eup %3477 }
 0x192   : > { %v709_v42 = vmul.f32 %v3478_v40, %v4291_v3 }
 0x194   : > { %v717_v44 = vmul.f32 %v2927_v41, %v709_v42 }
 0x196   : > { %v718_v45 = vpack.c.bf16 %v717_v44, %v716_v43 }
 0x198   : > { %912 = vmatmul.mubr.bf16.vlgmr.msra.gmra.mxu0 %v718_v45  ;;  %3153 = vmatmul.mubr.bf16.vlgmr.msra.gmra.mxu1 %v718_v45 }
 0x258   : > { %v913_v46 = vpop.f32.mrf.mxu0  ;;  %v4339_v47 = vpop.f32.mrf.mxu1 }
 0x259   : > { %971 = vrot.lane.b32.xlu1 %v913_v46, %s3905_s27  ;;  %v969_v13 = vmul.f32 %v963_v55, %v913_v46 }
 0x25a   : > { %v915_v48 = vpop.f32.mrf.mxu0  ;;  %v3154_v49 = vpop.f32.mrf.mxu1 }
 0x25b   : > { %989 = vrot.lane.b32.xlu0 %v915_v48, %s3905_s27  ;;  %v987_v59 = vmul.f32 %v963_v55, %v915_v48 }
 0x25c   : > { %v4341_v50 = vpop.f32.mrf.mxu1  ;;  %v917_v52 = vpop.f32.mrf.mxu0 }
 0x25d   : > { %3163 = vmatprep.subr.mxu1 %v4341_v50  ;;  %997 = vrot.lane.b32.xlu1 %v915_v48, %s3906_s24  ;;  %v970_v19 = vmul.f32 %v964_v5, %v917_v52 }
 0x25e   : > { %v3155_v51 = vpop.f32.mrf.mxu1  ;;  %3164 = vmatpush3.msra.mxu1 %v4341_v50  ;;  %v919_v53 = vpop.f32.mrf.mxu0 }
 0x25f   : > { %3165 = vmatprep.subr.mxu1 %v4339_v47  ;;  %v988_v8 = vmul.f32 %v964_v5, %v919_v53 }
 0x260   : > { %3166 = vmatpush3.msra.mxu1 %v4339_v47 }
 0x261   : > { %973 = vrot.lane.b32.xlu1 %v917_v52, %s3905_s27 }
 0x265   : > { %991 = vrot.lane.b32.xlu1 %v919_v53, %s3905_s27 }
 0x269   : > { %999 = vrot.lane.b32.xlu1 %v919_v53, %s3906_s24 }
 0x26d   : > { %979 = vrot.lane.b32.xlu1 %v913_v46, %s3906_s24 }
 0x271   : > { %981 = vrot.lane.b32.xlu1 %v917_v52, %s3906_s24 }
 0x2cb   : > { %v972_v54 = vpop.permute.xlu1 %971 }
 0x2cc   : > { %v975_v10 = vmul.f32 %v972_v54, %v965_v56 }
 0x2cd   : > { %v990_v57 = vpop.permute.xlu0 %989 }
 0x2ce   : > { %v993_v60 = vmul.f32 %v990_v57, %v965_v56  ;;  %v977_v16 = vadd.f32 %v975_v10, %v969_v13 }
 0x2cf   : > { %v998_v61 = vpop.permute.xlu1 %997 }
 0x2d0   : > { %v995_v62 = vadd.f32 %v993_v60, %v987_v59  ;;  %v1001_v63 = vmul.f32 %v998_v61, %v967_v58 }
 0x2d2   : > { %v4347_v0 = vadd.f32 %v1001_v63, %v995_v62 }
 0x2d3   : > { %v974_v1 = vpop.permute.xlu1 %973 }
 0x2d4   : > { %1205 = vrot.lane.b32.xlu0 %v4347_v0, %s3907_s23  ;;  %v976_v17 = vmul.f32 %v974_v1, %v966_v2 }
 0x2d6   : > { %v978_v22 = vadd.f32 %v976_v17, %v970_v19 }
 0x2d7   : > { %v992_v3 = vpop.permute.xlu1 %991 }
 0x2d8   : > { %v994_v4 = vmul.f32 %v992_v3, %v966_v2 }
 0x2da   : > { %v996_v11 = vadd.f32 %v994_v4, %v988_v8 }
 0x2db   : > { %v1000_v9 = vpop.permute.xlu1 %999 }
 0x2dc   : > { %v1002_v12 = vmul.f32 %v1000_v9, %v968_v7 }
 0x2de   : > { %v4351_v14 = vadd.f32 %v1002_v12, %v996_v11 }
 0x2df   : > { %v980_v15 = vpop.permute.xlu1 %979 }
 0x2e0   : > { %v983_v18 = vmul.f32 %v980_v15, %v967_v58  ;;  %1207 = vrot.lane.b32.xlu1 %v4351_v14, %s3907_s23  ;;  %3156 = vmatprep.subr.msk.mxu0 %vm1007_vm1, %v4351_v14 }
 0x2e1   : > { %3157 = vmatpush3.xpose.msk.msra.mxu0 %vm1007_vm1, %v4351_v14 }
 0x2e2   : > { %v4359_v20 = vadd.f32 %v983_v18, %v977_v16  ;;  %3158 = vmatprep.subr.msk.mxu0 %vm1007_vm1, %v4347_v0 }
 0x2e3   : > { %v982_v21 = vpop.permute.xlu1 %981 }
 0x2e4   : > { %v984_v23 = vmul.f32 %v982_v21, %v968_v7  ;;  %3160 = vmatprep.mubr.msk.f32.mxu0 %vm1007_vm1, %v4359_v20  ;;  %1201 = vrot.lane.b32.xlu1 %v4359_v20, %s3907_s23 }
 0x2e5   : > { %3159 = vmatpush3.xpose.msk.msra.mxu0 %vm1007_vm1, %v4347_v0 }
 0x2e6   : > { %v4369_v24 = vadd.f32 %v984_v23, %v978_v22 }
 0x2e8   : > { %1203 = vrot.lane.b32.xlu0 %v4369_v24, %s3907_s23  ;;  %3161 = vmatmul.mubr.msk.f32.vlgmr.msra.gmra.mxu0 %vm1007_vm1, %v4369_v24 }
 0x346   : > { %v1206_v26 = vpop.permute.xlu0 %1205 }
 0x352   : > { %v1208_v25 = vpop.permute.xlu1 %1207 }
 0x353   : > { %3170 = vmatprep.subr.msk.mxu0 %vm1007_vm1, %v1208_v25 }
 0x354   : > { %3171 = vmatpush3.xpose.msk.msra.mxu0 %vm1007_vm1, %v1208_v25 }
 0x355   : > { %3172 = vmatprep.subr.msk.mxu0 %vm1007_vm1, %v1206_v26 }
 0x356   : > { %v1202_v27 = vpop.permute.xlu1 %1201 }
 0x357   : > { %3174 = vmatprep.mubr.msk.f32.mxu0 %vm1007_vm1, %v1202_v27 }
 0x358   : > { %3173 = vmatpush3.xpose.msk.msra.mxu0 %vm1007_vm1, %v1206_v26 }
 0x35a   : > { %v1204_v29 = vpop.permute.xlu0 %1203 }
 0x35b   : > { %3175 = vmatmul.mubr.msk.f32.vlgmr.msra.gmra.mxu0 %vm1007_vm1, %v1204_v29 }
 0x3a8   : > { %v3162_v31 = vpop.f32.mrf.mxu0 }
 0x3a9   : > { %v1092_v33 = vadd.f32 %v3162_v31, %v4381_v30 }
 0x3aa   : > { %v1086_v34 = vpop.f32.mrf.mxu0 }
 0x3ab   : > { %v1087_v35 = vadd.f32 %v1086_v34, %v4383_v32  ;;  %v1099_v36 = vsel %vm1095_vm2, %v1092_v33, -inf }
 0x3ac   : > { %1100 = vmax.xlane.f32.xlu0 %v1099_v36 }
 0x3ad   : > { %v1096_v37 = vsel %vm1095_vm2, %v1087_v35, -inf }
 0x3ae   : > { %1097 = vmax.xlane.f32.xlu1 %v1096_v37 }
 0x41b   : > { %v3176_v38 = vpop.f32.mrf.mxu0 }
 0x41c   : > { %v1289_v39 = vadd.f32 %v3176_v38, %v4381_v30 }
 0x41d   : > { %v1283_v40 = vpop.f32.mrf.mxu0 }
 0x41e   : > { %v1284_v41 = vadd.f32 %v1283_v40, %v4383_v32  ;;  %v1295_v42 = vsel %vm1095_vm2, %v1289_v39, -inf }
 0x41f   : > { %1296 = vmax.xlane.f32.xlu1 %v1295_v42 }
 0x420   : > { %v1292_v43 = vsel %vm1095_vm2, %v1284_v41, -inf }
 0x421   : > { %1293 = vmax.xlane.f32.xlu0 %v1292_v43 }
 0x435   : > { %v1101_v44 = vpop.xlane.xlu0 %1100 }
 0x436   : > { %v1103_v45 = vsub.f32 %v1092_v33, %v1101_v44 }
 0x437   : > { %v1098_v46 = vpop.xlane.xlu1 %1097 }
 0x438   : > { %v1106_v48 = vmul.f32 1.442695, %v1103_v45  ;;  %v1102_v49 = vsub.f32 %v1087_v35, %v1098_v46 }
 0x43a   : > { %3479 = vpow2.f32 %v1106_v48  ;;  %v1104_v51 = vmul.f32 1.442695, %v1102_v49 }
 0x43c   : > { %3481 = vpow2.f32 %v1104_v51 }
 0x447   : > { %v3480_v52 = vpop.eup %3479 }
 0x448   : > { %v1111_v53 = vsel %vm1095_vm2, %v3480_v52, 0.0 }
 0x449   : > { %v3482_v54 = vpop.eup %3481  ;;  %1112 = vadd.xlane.f32.xlu1 %v1111_v53 }
 0x44a   : > { %v1108_v55 = vsel %vm1095_vm2, %v3482_v54, 0.0 }
 0x44b   : > { %1109 = vadd.xlane.f32.xlu0 %v1108_v55 }
 0x4a8   : > { %v1297_v56 = vpop.xlane.xlu1 %1296 }
 0x4a9   : > { %v1299_v57 = vsub.f32 %v1289_v39, %v1297_v56 }
 0x4aa   : > { %v1294_v58 = vpop.xlane.xlu0 %1293 }
 0x4ab   : > { %v1302_v59 = vmul.f32 1.442695, %v1299_v57  ;;  %v1298_v60 = vsub.f32 %v1284_v41, %v1294_v58 }
 0x4ad   : > { %3483 = vpow2.f32 %v1302_v59  ;;  %v1300_v61 = vmul.f32 1.442695, %v1298_v60 }
 0x4af   : > { %3485 = vpow2.f32 %v1300_v61 }
 0x4ba   : > { %v3484_v62 = vpop.eup %3483 }
 0x4bb   : > { %v1307_v63 = vsel %vm1095_vm2, %v3484_v62, 0.0 }
 0x4bc   : > { %v3486_v1 = vpop.eup %3485  ;;  %1308 = vadd.xlane.f32.xlu1 %v1307_v63 }
 0x4bd   : > { %v1304_v2 = vsel %vm1095_vm2, %v3486_v1, 0.0 }
 0x4be   : > { %1305 = vadd.xlane.f32.xlu0 %v1304_v2 }
 0x4cd   : > { %1316 = vrot.lane.b32.xlu1 %v4339_v47, %s3907_s23 }
 0x4d1   : > { %1420 = vrot.lane.b32.xlu1 %v4351_v14, %s3908_s13 }
 0x4d2   : > { %v1113_v3 = vpop.xlane.xlu1 %1112 }
 0x4d3   : > { %3487 = vrcp.f32 %v1113_v3 }
 0x4d4   : > { %1318 = vrot.lane.b32.xlu0 %v4341_v50, %s3907_s23  ;;  %v1110_v4 = vpop.xlane.xlu0 %1109 }
 0x4d5   : > { %3489 = vrcp.f32 %v1110_v4  ;;  %1414 = vrot.lane.b32.xlu1 %v4359_v20, %s3908_s13 }
 0x4d8   : > { %1418 = vrot.lane.b32.xlu0 %v4347_v0, %s3908_s13 }
 0x4dc   : > { %1416 = vrot.lane.b32.xlu0 %v4369_v24, %s3908_s13 }
 0x4e0   : > { %v3488_v5 = vpop.eup %3487 }
 0x4e1   : > { %v1117_v9 = vmul.f32 %v3488_v5, %v3480_v52 }
 0x4e2   : > { %v3490_v7 = vpop.eup %3489 }
 0x4e3   : > { %v1116_v8 = vmul.f32 %v3490_v7, %v3482_v54 }
 0x4e5   : > { %3167 = vmatprep.mubr.msk.f32.mxu1 %vm1095_vm2, %v1116_v8 }
 0x4e6   : > { %3168 = vmatmul.mubr.msk.f32.vlgmr.msra.gmra.mxu1 %vm1095_vm2, %v1117_v9 }
 0x545   : > { %v1309_v10 = vpop.xlane.xlu1 %1308 }
 0x546   : > { %3491 = vrcp.f32 %v1309_v10 }
 0x547   : > { %v1306_v11 = vpop.xlane.xlu0 %1305 }
 0x548   : > { %3493 = vrcp.f32 %v1306_v11 }
 0x549   : > { %v1317_v12 = vpop.permute.xlu1 %1316 }
 0x54b   : > { %v1319_v13 = vpop.permute.xlu0 %1318 }
 0x54c   : > { %3177 = vmatprep.subr.mxu1 %v1319_v13 }
 0x54d   : > { %3178 = vmatpush3.msra.mxu1 %v1319_v13  ;;  %v1421_v15 = vpop.permute.xlu1 %1420 }
 0x54e   : > { %3179 = vmatprep.subr.mxu1 %v1317_v12 }
 0x54f   : > { %3180 = vmatpush3.msra.mxu1 %v1317_v12  ;;  %v1419_v22 = vpop.permute.xlu0 %1418 }
 0x550   : > { %3184 = vmatprep.subr.msk.mxu1 %vm1007_vm1, %v1421_v15 }
 0x551   : > { %v1415_v21 = vpop.permute.xlu1 %1414 }
 0x553   : > { %v3492_v16 = vpop.eup %3491  ;;  %v1417_v23 = vpop.permute.xlu0 %1416 }
 0x554   : > { %v1313_v19 = vmul.f32 %v3492_v16, %v3484_v62 }
 0x555   : > { %v3494_v17 = vpop.eup %3493 }
 0x556   : > { %v1312_v18 = vmul.f32 %v3494_v17, %v3486_v1 }
 0x558   : > { %3181 = vmatprep.mubr.msk.f32.mxu1 %vm1095_vm2, %v1312_v18 }
 0x559   : > { %3182 = vmatmul.mubr.msk.f32.vlgmr.msra.gmra.mxu1 %vm1095_vm2, %v1313_v19 }
 0x55a   : > { %3185 = vmatpush3.xpose.msk.msra.mxu1 %vm1007_vm1, %v1421_v15  ;;  %3188 = vmatprep.mubr.msk.f32.mxu1 %vm1007_vm1, %v1415_v21 }
 0x55b   : > { %3186 = vmatprep.subr.msk.mxu1 %vm1007_vm1, %v1419_v22 }
 0x55e   : > { %3187 = vmatpush3.xpose.msk.msra.mxu1 %vm1007_vm1, %v1419_v22 }
 0x561   : > { %3189 = vmatmul.mubr.msk.f32.vlgmr.msra.gmra.mxu1 %vm1007_vm1, %v1417_v23 }
 0x5a6   : > { %v3169_v25 = vpop.f32.mrf.mxu1 }
 0x5a7   : > { %1200 = vst.msk [vmem:[#allocation3 + $0x8] sm:$0xff] %vm1007_vm1, %v3169_v25  ;;  %v3403_v25 = vld [vmem:[%s4259_s8 + $0x38] sm:$0xff]  }
 0x5a8   : > { %v1190_v26 = vpop.f32.mrf.mxu1 }
 0x5a9   : > { %1199 = vst.msk [vmem:[#allocation3] sm:$0xff] %vm1007_vm1, %v1190_v26  ;;  %v3404_v26 = vld [vmem:[%s4259_s8 + $0x30] sm:$0xff]  }
 0x619   : > { %v4421_v27 = vpop.f32.mrf.mxu1 }
 0x61b   : > { %v4423_v29 = vpop.f32.mrf.mxu1 }
 0x621   : > { %v3190_v31 = vpop.f32.mrf.mxu1 }
 0x622   : > { %v1502_v33 = vadd.f32 %v3190_v31, %v4381_v30  ;;  %v3407_v31 = vld [vmem:[%s4259_s8 + $0x18] sm:$0xff]  }
 0x623   : > { %v1496_v34 = vpop.f32.mrf.mxu1 }
 0x624   : > { %v1497_v35 = vadd.f32 %v1496_v34, %v4383_v32  ;;  %v1508_v36 = vsel %vm1095_vm2, %v1502_v33, -inf  ;;  %v3409_v34 = vld [vmem:[%s4259_s8 + $0x8] sm:$0xff]  }
 0x625   : > { %1509 = vmax.xlane.f32.xlu0 %v1508_v36 }
 0x626   : > { %v1505_v37 = vsel %vm1095_vm2, %v1497_v35, -inf }
 0x627   : > { %1506 = vmax.xlane.f32.xlu1 %v1505_v37 }
 0x6ae   : > { %v1510_v38 = vpop.xlane.xlu0 %1509 }
 0x6af   : > { %v1512_v39 = vsub.f32 %v1502_v33, %v1510_v38  ;;  %v3408_v33 = vld [vmem:[%s4259_s8 + $0x10] sm:$0xff]  }
 0x6b0   : > { %v1507_v40 = vpop.xlane.xlu1 %1506 }
 0x6b1   : > { %v1515_v41 = vmul.f32 1.442695, %v1512_v39  ;;  %v1511_v42 = vsub.f32 %v1497_v35, %v1507_v40  ;;  %v3410_v35 = vld [vmem:[%s4259_s8] sm:$0xff]  }
 0x6b3   : > { %3495 = vpow2.f32 %v1515_v41  ;;  %v1513_v43 = vmul.f32 1.442695, %v1511_v42 }
 0x6b5   : > { %3497 = vpow2.f32 %v1513_v43  ;;  %v3413_v43 = vld [vmem:[%s4261_s22 + $0xe4] ss:$16 sps:$4 sm:$0xff]  }
 0x6c0   : > { %v3496_v44 = vpop.eup %3495 }
 0x6c1   : > { %v1520_v45 = vsel %vm1095_vm2, %v3496_v44, 0.0 }
 0x6c2   : > { %v3498_v46 = vpop.eup %3497  ;;  %1521 = vadd.xlane.f32.xlu1 %v1520_v45  ;;  %v3416_v45 = vld [vmem:[%s4261_s22 + $0xec] ss:$16 sps:$4 sm:$0xff]  }
 0x6c3   : > { %v1517_v48 = vsel %vm1095_vm2, %v3498_v46, 0.0 }
 0x6c4   : > { %1518 = vadd.xlane.f32.xlu0 %v1517_v48  ;;  %v3531_v48 = vld [vmem:[#allocation2] sm:$0xff] }
 0x6d3   : > { %1527 = vrot.lane.b32.xlu1 %v4339_v47, %s3908_s13 }
 0x6d7   : > { %1631 = vrot.lane.b32.xlu1 %v4351_v14, %s3909_s29 }
 0x6da   : > { %1529 = vrot.lane.b32.xlu0 %v4341_v50, %s3908_s13 }
 0x6db   : > { %1625 = vrot.lane.b32.xlu1 %v4359_v20, %s3909_s29 }
 0x6de   : > { %1629 = vrot.lane.b32.xlu0 %v4347_v0, %s3909_s29 }
 0x6e2   : > { %1627 = vrot.lane.b32.xlu0 %v4369_v24, %s3909_s29 }
 0x74b   : > { %v1522_v49 = vpop.xlane.xlu1 %1521 }
 0x74c   : > { %3499 = vrcp.f32 %v1522_v49 }
 0x74d   : > { %v1519_v51 = vpop.xlane.xlu0 %1518 }
 0x74e   : > { %3501 = vrcp.f32 %v1519_v51 }
 0x74f   : > { %v1528_v52 = vpop.permute.xlu1 %1527 }
 0x751   : > { %v1530_v53 = vpop.permute.xlu0 %1529 }
 0x752   : > { %3191 = vmatprep.subr.mxu0 %v1530_v53 }
 0x753   : > { %3192 = vmatpush3.msra.mxu0 %v1530_v53  ;;  %v1632_v14 = vpop.permute.xlu1 %1631  ;;  %v3532_v53 = vld [vmem:[#allocation2 + $0x8] sm:$0xff] }
 0x754   : > { %3193 = vmatprep.subr.mxu0 %v1528_v52 }
 0x755   : > { %3194 = vmatpush3.msra.mxu0 %v1528_v52  ;;  %v1630_v56 = vpop.permute.xlu0 %1629 }
 0x756   : > { %3198 = vmatprep.subr.msk.mxu0 %vm1007_vm1, %v1632_v14 }
 0x757   : > { %v1626_v24 = vpop.permute.xlu1 %1625 }
 0x759   : > { %v3500_v20 = vpop.eup %3499  ;;  %v1628_v57 = vpop.permute.xlu0 %1627 }
 0x75a   : > { %v1526_v0 = vmul.f32 %v3500_v20, %v3496_v44  ;;  %v3414_v44 = vld [vmem:[%s4261_s22 + $0xe8] ss:$16 sps:$4 sm:$0xff]  }
 0x75b   : > { %v3502_v54 = vpop.eup %3501 }
 0x75c   : > { %v1525_v55 = vmul.f32 %v3502_v54, %v3498_v46 }
 0x75e   : > { %3195 = vmatprep.mubr.msk.f32.mxu0 %vm1095_vm2, %v1525_v55  ;;  %v3419_v55 = vld [vmem:[%s4261_s22 + $0xc4] ss:$16 sps:$4 sm:$0xff]  }
 0x75f   : > { %3196 = vmatmul.mubr.msk.f32.vlgmr.msra.gmra.mxu0 %vm1095_vm2, %v1526_v0  ;;  %v3422_v0 = vld [vmem:[%s4261_s22 + $0xcc] ss:$16 sps:$4 sm:$0xff]  }
 0x760   : > { %3199 = vmatpush3.xpose.msk.msra.mxu0 %vm1007_vm1, %v1632_v14  ;;  %3202 = vmatprep.mubr.msk.f32.mxu0 %vm1007_vm1, %v1626_v24  ;;  %v3417_v24 = vld [vmem:[%s4261_s22 + $0xc0] ss:$16 sps:$4 sm:$0xff]  }
 0x761   : > { %3200 = vmatprep.subr.msk.mxu0 %vm1007_vm1, %v1630_v56 }
 0x764   : > { %3201 = vmatpush3.xpose.msk.msra.mxu0 %vm1007_vm1, %v1630_v56  ;;  %v3420_v56 = vld [vmem:[%s4261_s22 + $0xc8] ss:$16 sps:$4 sm:$0xff]  }
 0x765   : > { %2162 = vmatprep.subr.bf16.mxu0 %v3413_v43  ;;  %v3468_v43 = vld [vmem:[%s4263_s25 + $0x18] sm:$0xff]  }
 0x767   : > { %3203 = vmatmul.mubr.msk.f32.vlgmr.msra.gmra.mxu0 %vm1007_vm1, %v1628_v57  ;;  %v3425_v57 = vld [vmem:[%s4261_s22 + $0xa4] ss:$16 sps:$4 sm:$0xff]  }
 0x768   : > { %2194 = vmatprep.mubr.bf16.mxu0 %v3903_v28 }
 0x81f   : > { %v3197_v58 = vpop.f32.mrf.mxu0 }
 0x821   : > { %v1605_v59 = vpop.f32.mrf.mxu0 }
 0x827   : > { %v3204_v60 = vpop.f32.mrf.mxu0 }
 0x828   : > { %v1713_v61 = vadd.f32 %v3204_v60, %v4381_v30  ;;  %v3426_v60 = vld [vmem:[%s4261_s22 + $0xa8] ss:$16 sps:$4 sm:$0xff]  }
 0x829   : > { %v1707_v62 = vpop.f32.mrf.mxu0 }
 0x82a   : > { %v1708_v63 = vadd.f32 %v1707_v62, %v4383_v32  ;;  %v1719_v1 = vsel %vm1095_vm2, %v1713_v61, -inf  ;;  %v3434_v62 = vld [vmem:[%s4261_s22 + $0x8c] ss:$16 sps:$4 sm:$0xff]  }
 0x82b   : > { %1720 = vmax.xlane.f32.xlu0 %v1719_v1  ;;  %v3432_v1 = vld [vmem:[%s4261_s22 + $0x88] ss:$16 sps:$4 sm:$0xff]  }
 0x82c   : > { %v1716_v2 = vsel %vm1095_vm2, %v1708_v63, -inf }
 0x82d   : > { %1717 = vmax.xlane.f32.xlu1 %v1716_v2  ;;  %v3437_v2 = vld [vmem:[%s4261_s22 + $0x64] ss:$16 sps:$4 sm:$0xff]  }
 0x8b4   : > { %v1721_v3 = vpop.xlane.xlu0 %1720 }
 0x8b5   : > { %v1723_v4 = vsub.f32 %v1713_v61, %v1721_v3  ;;  %v3431_v61 = vld [vmem:[%s4261_s22 + $0x84] ss:$16 sps:$4 sm:$0xff]   ;;  %v3435_v3 = vld [vmem:[%s4261_s22 + $0x60] ss:$16 sps:$4 sm:$0xff]  }
 0x8b6   : > { %v1718_v5 = vpop.xlane.xlu1 %1717 }
 0x8b7   : > { %v1726_v7 = vmul.f32 1.442695, %v1723_v4  ;;  %v1722_v8 = vsub.f32 %v1708_v63, %v1718_v5  ;;  %v3429_v63 = vld [vmem:[%s4261_s22 + $0x80] ss:$16 sps:$4 sm:$0xff]   ;;  %v3438_v4 = vld [vmem:[%s4261_s22 + $0x68] ss:$16 sps:$4 sm:$0xff]  }
 0x8b8   : > { %v3440_v5 = vld [vmem:[%s4261_s22 + $0x6c] ss:$16 sps:$4 sm:$0xff]  }
 0x8b9   : > { %3503 = vpow2.f32 %v1726_v7  ;;  %v1724_v9 = vmul.f32 1.442695, %v1722_v8  ;;  %v3443_v7 = vld [vmem:[%s4261_s22 + $0x44] ss:$16 sps:$4 sm:$0xff]   ;;  %v3446_v8 = vld [vmem:[%s4261_s22 + $0x4c] ss:$16 sps:$4 sm:$0xff]  }
 0x8bb   : > { %3505 = vpow2.f32 %v1724_v9  ;;  %v3441_v9 = vld [vmem:[%s4261_s22 + $0x40] ss:$16 sps:$4 sm:$0xff]  }
 0x8c6   : > { %v3504_v10 = vpop.eup %3503 }
 0x8c7   : > { %v1731_v30 = vsel %vm1095_vm2, %v3504_v10, 0.0 }
 0x8c8   : > { %v3506_v11 = vpop.eup %3505  ;;  %1732 = vadd.xlane.f32.xlu1 %v1731_v30  ;;  %v3449_v30 = vld [vmem:[%s4261_s22 + $0x24] ss:$16 sps:$4 sm:$0xff]  }
 0x8c9   : > { %v1728_v32 = vsel %vm1095_vm2, %v3506_v11, 0.0 }
 0x8ca   : > { %1729 = vadd.xlane.f32.xlu0 %v1728_v32  ;;  %v3447_v32 = vld [vmem:[%s4261_s22 + $0x20] ss:$16 sps:$4 sm:$0xff]  }
 0x8d9   : > { %1738 = vrot.lane.b32.xlu1 %v4339_v47, %s3909_s29 }
 0x8dd   : > { %1405 = vrot.lane.b32.xlu1 %v4423_v29, %s3909_s29  ;;  %v3406_v29 = vld [vmem:[%s4259_s8 + $0x20] sm:$0xff]  }
 0x8e0   : > { %1740 = vrot.lane.b32.xlu0 %v4341_v50, %s3909_s29 }
 0x8e1   : > { %1616 = vrot.lane.b32.xlu1 %v1605_v59, %s3908_s13  ;;  %v3423_v59 = vld [vmem:[%s4261_s22 + $0xa0] ss:$16 sps:$4 sm:$0xff]  }
 0x8e4   : > { %1407 = vrot.lane.b32.xlu0 %v4421_v27, %s3909_s29  ;;  %v3405_v27 = vld [vmem:[%s4259_s8 + $0x28] sm:$0xff]  }
 0x8e8   : > { %1618 = vrot.lane.b32.xlu0 %v3197_v58, %s3908_s13  ;;  %v3428_v58 = vld [vmem:[%s4261_s22 + $0xac] ss:$16 sps:$4 sm:$0xff]  }
 0x951   : > { %v1733_v12 = vpop.xlane.xlu1 %1732 }
 0x952   : > { %3507 = vrcp.f32 %v1733_v12  ;;  %v3450_v12 = vld [vmem:[%s4261_s22 + $0x28] ss:$16 sps:$4 sm:$0xff]  }
 0x953   : > { %v1730_v13 = vpop.xlane.xlu0 %1729 }
 0x954   : > { %3509 = vrcp.f32 %v1730_v13  ;;  %v3455_v13 = vld [vmem:[%s4261_s22 + $0x4] ss:$16 sps:$4 sm:$0xff]  }
 0x955   : > { %v1739_v15 = vpop.permute.xlu1 %1738 }
 0x957   : > { %v1741_v16 = vpop.permute.xlu0 %1740 }
 0x958   : > { %3205 = vmatprep.subr.mxu1 %v1741_v16 }
 0x959   : > { %3206 = vmatpush3.msra.mxu1 %v1741_v16  ;;  %v1406_v47 = vpop.permute.xlu1 %1405  ;;  %v3453_v16 = vld [vmem:[%s4261_s22] ss:$16 sps:$4 sm:$0xff]  }
 0x95a   : > { %1412 = vst.msk [vmem:[#allocation3] sm:$0xff] %vm1411_vm3, %v1406_v47  ;;  %3207 = vmatprep.subr.mxu1 %v1739_v15  ;;  %v3456_v47 = vld [vmem:[%s4261_s22 + $0x8] ss:$16 sps:$4 sm:$0xff]  }
 0x95b   : > { %v1408_v50 = vpop.permute.xlu0 %1407  ;;  %3208 = vmatpush3.msra.mxu1 %v1739_v15  ;;  %v3458_v15 = vld [vmem:[%s4261_s22 + $0xc] ss:$16 sps:$4 sm:$0xff]  }
 0x95c   : > { %1413 = vst.msk [vmem:[#allocation3 + $0x8] sm:$0xff] %vm1411_vm3, %v1408_v50  ;;  %3212 = vmatprep.subr.bf16.mxu1 %v3902_v6 }
 0x95d   : > { %v1617_v17 = vpop.permute.xlu1 %1616 }
 0x95e   : > { %1623 = vst.msk [vmem:[#allocation3] sm:$0xff] %vm1622_vm4, %v1617_v17 }
 0x95f   : > { %v1619_v18 = vpop.permute.xlu0 %1618  ;;  %v3508_v19 = vpop.eup %3507 }
 0x960   : > { %1624 = vst.msk [vmem:[#allocation3 + $0x8] sm:$0xff] %vm1622_vm4, %v1619_v18  ;;  %v1737_v23 = vmul.f32 %v3508_v19, %v3504_v10  ;;  %v3444_v10 = vld [vmem:[%s4261_s22 + $0x48] ss:$16 sps:$4 sm:$0xff]  }
 0x961   : > { %v3510_v21 = vpop.eup %3509 }
 0x962   : > { %v1736_v22 = vmul.f32 %v3510_v21, %v3506_v11  ;;  %v3452_v11 = vld [vmem:[%s4261_s22 + $0x2c] ss:$16 sps:$4 sm:$0xff]  }
 0x964   : > { %3209 = vmatprep.mubr.msk.f32.mxu1 %vm1095_vm2, %v1736_v22 }
 0x965   : > { %3210 = vmatmul.mubr.msk.f32.vlgmr.msra.gmra.mxu1 %vm1095_vm2, %v1737_v23 }
 0x966   : > { %3228 = vmatprep.mubr.msk.bf16.mxu1 %vm3904_vm0, %v3902_v6  ;;  %3213 = vmatpush3.bf16.msra.mxu1 %v3403_v25 }
 0x967   : > { %3214 = vmatprep.subr.bf16.mxu1 %v3902_v6 }
 0x96a   : > { %3215 = vmatpush3.bf16.msra.mxu1 %v3404_v26 }
 0x96b   : > { %3216 = vmatprep.subr.bf16.mxu1 %v3902_v6 }
 0x96e   : > { %3217 = vmatpush3.bf16.msra.mxu1 %v3405_v27  ;;  %v2984_v27 = vld [vmem:[%s682_s21] ss:$0 sm:$0xff] }
 0x96f   : > { %3218 = vmatprep.subr.bf16.mxu1 %v3902_v6 }
 0x972   : > { %3219 = vmatpush3.bf16.msra.mxu1 %v3406_v29 }
 0x973   : > { %3220 = vmatprep.subr.bf16.mxu1 %v3902_v6 }
 0x976   : > { %3221 = vmatpush3.bf16.msra.mxu1 %v3407_v31 }
 0x977   : > { %3222 = vmatprep.subr.bf16.mxu1 %v3902_v6 }
 0x97a   : > { %3223 = vmatpush3.bf16.msra.mxu1 %v3408_v33 }
 0x97b   : > { %3224 = vmatprep.subr.bf16.mxu1 %v3902_v6 }
 0x97e   : > { %3225 = vmatpush3.bf16.msra.mxu1 %v3409_v34 }
 0x97f   : > { %3226 = vmatprep.subr.bf16.mxu1 %v3902_v6  ;;  %v3411_v6 = vld [vmem:[%s4261_s22 + $0xe0] ss:$16 sps:$4 sm:$0xff]  }
 0x980   : > { %2163 = vmatpush1.bf16.msra.mxu0 %v3411_v6  ;;  %v3467_v6 = vld [vmem:[%s4263_s25 + $0x58] sm:$0xff]  }
 0x981   : > { %2164 = vmatprep.subr.bf16.mxu0 %v3419_v55 }
 0x982   : > { %3227 = vmatpush3.bf16.msra.mxu1 %v3410_v35  ;;  %v3459_v35 = vld [vmem:[%s4263_s25 + $0x78] sm:$0xff]  }
 0x983   : > { %2205 = vmatprep.subr.bf16.mxu1 %v3416_v45  ;;  %v3470_v45 = vld [vmem:[%s4263_s25 + $0x10] sm:$0xff]  }
 0x984   : > { %2165 = vmatpush1.bf16.msra.mxu0 %v3417_v24 }
 0x985   : > { %2166 = vmatprep.subr.bf16.mxu0 %v3425_v57 }
 0x988   : > { %2167 = vmatpush1.bf16.msra.mxu0 %v3423_v59 }
 0x989   : > { %2168 = vmatprep.subr.bf16.mxu0 %v3431_v61 }
 0x98c   : > { %2169 = vmatpush1.bf16.msra.mxu0 %v3429_v63 }
 0x98d   : > { %2170 = vmatprep.subr.bf16.mxu0 %v3437_v2 }
 0x990   : > { %2171 = vmatpush1.bf16.msra.mxu0 %v3435_v3 }
 0x991   : > { %2172 = vmatprep.subr.bf16.mxu0 %v3443_v7 }
 0x994   : > { %2173 = vmatpush1.bf16.msra.mxu0 %v3441_v9 }
 0x995   : > { %2174 = vmatprep.subr.bf16.mxu0 %v3449_v30 }
 0x998   : > { %2175 = vmatpush1.bf16.msra.mxu0 %v3447_v32 }
 0x999   : > { %2176 = vmatprep.subr.bf16.mxu0 %v3455_v13 }
 0x99c   : > { %2177 = vmatpush1.bf16.msra.mxu0 %v3453_v16 }
 0x99d   : > { %3114 = vmatprep.subr.bf16.mxu0 %v3459_v35 }
 0xa25   : > { %v3211_v36 = vpop.f32.mrf.mxu1 }
 0xa26   : > { %1829 = vrot.lane.b32.xlu0 %v3211_v36, %s3907_s23  ;;  %v3460_v36 = vld [vmem:[%s4263_s25 + $0x38] sm:$0xff]  }
 0xa27   : > { %v1816_v37 = vpop.f32.mrf.mxu1 }
 0xa28   : > { %1827 = vrot.lane.b32.xlu1 %v1816_v37, %s3907_s23  ;;  %v3461_v37 = vld [vmem:[%s4263_s25 + $0x70] sm:$0xff]  }
 0xa98   : > { %v1830_v38 = vpop.permute.xlu0 %1829 }
 0xa99   : > { %1835 = vst.msk [vmem:[#allocation3 + $0x8] sm:$0xff] %vm1833_vm5, %v1830_v38  ;;  %v3462_v38 = vld [vmem:[%s4263_s25 + $0x30] sm:$0xff]  }
 0xa9a   : > { %v1828_v39 = vpop.permute.xlu1 %1827 }
 0xa9b   : > { %1834 = vst.msk [vmem:[#allocation3] sm:$0xff] %vm1833_vm5, %v1828_v39  ;;  %v3463_v39 = vld [vmem:[%s4263_s25 + $0x68] sm:$0xff]  }
 0xaa0   : > { %v1837_v41 = vld [vmem:[#allocation3 + $0x8] sm:$0xff] }
 0xaa2   : > { %v1836_v40 = vld [vmem:[#allocation3] sm:$0xff] }
 0xaa3   : > { %v1838_v42 = vpack.c.bf16 %v1837_v41, %v1836_v40  ;;  %v3464_v40 = vld [vmem:[%s4263_s25 + $0x28] sm:$0xff]   ;;  %v3465_v41 = vld [vmem:[%s4263_s25 + $0x60] sm:$0xff]  }
 0xaa5   : > { %3229 = vmatmul.mubr.bf16.vlgmr.msra.gmra.mxu1 %v1838_v42  ;;  %v3466_v42 = vld [vmem:[%s4263_s25 + $0x20] sm:$0xff]  }
 0xaa6   : > { %2237 = vmatprep.mubr.bf16.mxu1 %v3903_v28  ;;  %2206 = vmatpush1.bf16.msra.mxu1 %v3414_v44  ;;  %v3469_v44 = vld [vmem:[%s4263_s25 + $0x50] sm:$0xff]  }
 0xaa7   : > { %2207 = vmatprep.subr.bf16.mxu1 %v3422_v0 }
 0xaaa   : > { %2208 = vmatpush1.bf16.msra.mxu1 %v3420_v56 }
 0xaab   : > { %2209 = vmatprep.subr.bf16.mxu1 %v3428_v58 }
 0xaae   : > { %2210 = vmatpush1.bf16.msra.mxu1 %v3426_v60 }
 0xaaf   : > { %2211 = vmatprep.subr.bf16.mxu1 %v3434_v62 }
 0xab2   : > { %2212 = vmatpush1.bf16.msra.mxu1 %v3432_v1 }
 0xab3   : > { %2213 = vmatprep.subr.bf16.mxu1 %v3440_v5 }
 0xab6   : > { %2214 = vmatpush1.bf16.msra.mxu1 %v3438_v4 }
 0xab7   : > { %2215 = vmatprep.subr.bf16.mxu1 %v3446_v8 }
 0xaba   : > { %2216 = vmatpush1.bf16.msra.mxu1 %v3444_v10 }
 0xabb   : > { %2217 = vmatprep.subr.bf16.mxu1 %v3452_v11 }
 0xabe   : > { %2218 = vmatpush1.bf16.msra.mxu1 %v3450_v12 }
 0xabf   : > { %2219 = vmatprep.subr.bf16.mxu1 %v3458_v15 }
 0xac2   : > { %2220 = vmatpush1.bf16.msra.mxu1 %v3456_v47 }
 0xb65   : > { %v1937_v46 = vpop.f32.mrf.mxu1 }
 0xb66   : > { %v4495_v49 = vadd.f32 %v3531_v48, %v1937_v46  ;;  %v3471_v46 = vld [vmem:[%s4263_s25 + $0x48] sm:$0xff]  }
 0xb67   : > { %v3230_v51 = vpop.f32.mrf.mxu1  ;;  %v3472_v48 = vld [vmem:[%s4263_s25 + $0x8] sm:$0xff]  }
 0xb68   : > { %v1947_v28 = vmul.f32 %v4495_v49, %v4495_v49  ;;  %v3473_v51 = vld [vmem:[%s4263_s25 + $0x40] sm:$0xff]  }
 0xb69   : > { %v1940_v52 = vpop.f32.mrf.mxu1 }
 0xb6a   : > { %v4499_v14 = vadd.f32 %v3532_v53, %v1940_v52  ;;  %1949 = vadd.xlane.f32.xlu1 %v1947_v28  ;;  %v3474_v28 = vld [vmem:[%s4263_s25] sm:$0xff]  }
 0xb6b   : > { %v3231_v20 = vpop.f32.mrf.mxu1 }
 0xb6c   : > { %v1948_v54 = vmul.f32 %v4499_v14, %v4499_v14 }
 0xb6e   : > { %1951 = vadd.xlane.f32.xlu0 %v1948_v54 }
 0xbf3   : > { %v1950_v50 = vpop.xlane.xlu1 %1949 }
 0xbf4   : > { %v1953_v17 = vmul.f32 0.0078125, %v1950_v50 }
 0xbf6   : > { %v1955_v18 = vadd.f32 1e-06, %v1953_v17 }
 0xbf7   : > { %v1952_v19 = vpop.xlane.xlu0 %1951 }
 0xbf8   : > { %3511 = vrsqrt.f32 %v1955_v18  ;;  %v1954_v21 = vmul.f32 0.0078125, %v1952_v19 }
 0xbfa   : > { %v1956_v22 = vadd.f32 1e-06, %v1954_v21 }
 0xbfc   : > { %3513 = vrsqrt.f32 %v1956_v22 }
 0xc05   : > { %v3512_v23 = vpop.eup %3511 }
 0xc06   : > { %v1959_v25 = vmul.f32 %v3512_v23, %v4495_v49 }
 0xc08   : > { %v1967_v31 = vmul.f32 %v2984_v27, %v1959_v25 }
 0xc09   : > { %v3514_v26 = vpop.eup %3513 }
 0xc0a   : > { %v1960_v29 = vmul.f32 %v3514_v26, %v4499_v14 }
 0xc0c   : > { %v1968_v33 = vmul.f32 %v2984_v27, %v1960_v29 }
 0xc0e   : > { %v1969_v34 = vpack.c.bf16 %v1968_v33, %v1967_v31 }
 0xc10   : > { %2195 = vmatmul.mubr.bf16.vlgmr.msra.gmra.mxu0 %v1969_v34  ;;  %2238 = vmatmul.mubr.bf16.vlgmr.msra.gmra.mxu1 %v1969_v34 }
 0xc11   : > { %3115 = vmatpush3.bf16.msra.mxu0 %v3460_v36 }
 0xc12   : > { %3116 = vmatprep.subr.bf16.mxu0 %v3461_v37 }
 0xc15   : > { %3117 = vmatpush3.bf16.msra.mxu0 %v3462_v38 }
 0xc16   : > { %3118 = vmatprep.subr.bf16.mxu0 %v3463_v39 }
 0xc19   : > { %3119 = vmatpush3.bf16.msra.mxu0 %v3464_v40 }
 0xc1a   : > { %3120 = vmatprep.subr.bf16.mxu0 %v3465_v41 }
 0xc1d   : > { %3121 = vmatpush3.bf16.msra.mxu0 %v3466_v42 }
 0xc1e   : > { %3122 = vmatprep.subr.bf16.mxu0 %v3467_v6 }
 0xc21   : > { %3123 = vmatpush3.bf16.msra.mxu0 %v3468_v43 }
 0xc22   : > { %3124 = vmatprep.subr.bf16.mxu0 %v3469_v44 }
 0xc25   : > { %3125 = vmatpush3.bf16.msra.mxu0 %v3470_v45 }
 0xc26   : > { %3126 = vmatprep.subr.bf16.mxu0 %v3471_v46 }
 0xc29   : > { %3127 = vmatpush3.bf16.msra.mxu0 %v3472_v48 }
 0xc2a   : > { %3128 = vmatprep.subr.bf16.mxu0 %v3473_v51 }
 0xc2d   : > { %3129 = vmatpush3.bf16.msra.mxu0 %v3474_v28 }
 0xcd0   : > { %v2196_v52 = vpop.f32.mrf.mxu0  ;;  %v2239_v2 = vpop.f32.mrf.mxu1 }
 0xcd1   : > { %v3017_v53 = vmul.f32 -1.442695, %v2196_v52 }
 0xcd2   : > { %v2198_v20 = vpop.f32.mrf.mxu0  ;;  %v2241_v3 = vpop.f32.mrf.mxu1 }
 0xcd3   : > { %3515 = vpow2.f32 %v3017_v53  ;;  %v3018_v54 = vmul.f32 -1.442695, %v2198_v20 }
 0xcd4   : > { %v2200_v55 = vpop.f32.mrf.mxu0  ;;  %v2243_v8 = vpop.f32.mrf.mxu1 }
 0xcd5   : > { %3517 = vpow2.f32 %v3018_v54  ;;  %v3019_v0 = vmul.f32 -1.442695, %v2200_v55 }
 0xcd6   : > { %v2202_v24 = vpop.f32.mrf.mxu0  ;;  %v2245_v13 = vpop.f32.mrf.mxu1 }
 0xcd7   : > { %3519 = vpow2.f32 %v3019_v0  ;;  %v3020_v56 = vmul.f32 -1.442695, %v2202_v24 }
 0xcd9   : > { %3521 = vpow2.f32 %v3020_v56 }
 0xce0   : > { %v3516_v57 = vpop.eup %3515 }
 0xce1   : > { %v2260_v59 = vadd.f32 1.0, %v3516_v57 }
 0xce2   : > { %v3518_v58 = vpop.eup %3517 }
 0xce3   : > { %v2261_v60 = vadd.f32 1.0, %v3518_v58 }
 0xce4   : > { %v3520_v61 = vpop.eup %3519 }
 0xce5   : > { %3523 = vrcp.f32 %v2261_v60  ;;  %v2262_v62 = vadd.f32 1.0, %v3520_v61 }
 0xce6   : > { %v3522_v63 = vpop.eup %3521  ;;  %3525 = vrcp.f32 %v2260_v59 }
 0xce7   : > { %3527 = vrcp.f32 %v2262_v62  ;;  %v2263_v1 = vadd.f32 1.0, %v3522_v63 }
 0xce9   : > { %3529 = vrcp.f32 %v2263_v1 }
 0xcf2   : > { %v3524_v4 = vpop.eup %3523 }
 0xcf3   : > { %v3526_v5 = vpop.eup %3525  ;;  %v2273_v9 = vmul.f32 %v3524_v4, %v2198_v20 }
 0xcf4   : > { %v3528_v7 = vpop.eup %3527  ;;  %v2272_v11 = vmul.f32 %v3526_v5, %v2196_v52 }
 0xcf5   : > { %v2274_v10 = vmul.f32 %v3528_v7, %v2200_v55  ;;  %v2277_v15 = vmul.f32 %v2273_v9, %v2241_v3 }
 0xcf6   : > { %v3530_v30 = vpop.eup %3529  ;;  %v2276_v47 = vmul.f32 %v2272_v11, %v2239_v2 }
 0xcf7   : > { %v2275_v32 = vmul.f32 %v3530_v30, %v2202_v24  ;;  %v2278_v12 = vmul.f32 %v2274_v10, %v2243_v8 }
 0xcf9   : > { %v2279_v16 = vmul.f32 %v2275_v32, %v2245_v13  ;;  %v2280_v17 = vpack.c.bf16 %v2278_v12, %v2276_v47 }
 0xcfb   : > { %v2281_v50 = vpack.c.bf16 %v2279_v16, %v2277_v15 }
 0xcfd   : > { %2442 = vmatprep.mubr.bf16.mxu0 %v2281_v50 }
 0xcfe   : > { %2443 = vmatmul.mubr.bf16.vlgmr.msra.gmra.mxu0 %v2280_v17 }
 0xdbe   : > { %v3130_v18 = vpop.f32.mrf.mxu0 }
 0xdc0   : > { %v3131_v19 = vpop.f32.mrf.mxu0 }
 0xdc1   : > { %v3132_v21 = vadd.f32 %v3131_v19, %v3130_v18 }
 0xdc2   : > { %v3133_v22 = vpop.f32.mrf.mxu0 }
 0xdc3   : > { %v2451_v23 = vadd.f32 %v3132_v21, %v4495_v49 }
 0xdc4   : > { %v3134_v25 = vpop.f32.mrf.mxu0 }
 0xdc5   : > { %2453 = vst [vmem:[#allocation2] sm:$0xff] %v2451_v23  ;;  %v3135_v26 = vadd.f32 %v3134_v25, %v3133_v22  ;;  %2458 = sbr.rel (%p3037_p12) target bundleno = 4493 (0x118d), region = 120 }
 0xdc7   : > { %v2452_v27 = vadd.f32 %v3135_v26, %v4499_v14 }
 0xdc9   : > { %2454 = vst [vmem:[#allocation2 + $0x8] sm:$0xff] %v2452_v27 }
 0xdca   : > { %v2460_v29 = vmul.f32 %v2451_v23, %v2451_v23  ;;  %v3535_v31 = vld [vmem:[#allocation16 + $0x74] ss:$8 sps:$4 sm:$0xff]   ;;  %v3537_v33 = vld [vmem:[#allocation16 + $0x70] ss:$8 sps:$4 sm:$0xff]   ;;  %v2461_v34 = vmul.f32 %v2452_v27, %v2452_v27  ;;  %v3538_v35 = vld [vmem:[#allocation16 + $0x64] ss:$8 sps:$4 sm:$0xff]   ;;  %v2654_v12 = vlaneseq }
 0xdcb   : > { %2579 = vmatprep.subr.bf16.mxu0 %v3535_v31  ;;  %v3540_v36 = vld [vmem:[#allocation16 + $0x60] ss:$8 sps:$4 sm:$0xff]   ;;  %v3541_v49 = vld [vmem:[#allocation16 + $0x54] ss:$8 sps:$4 sm:$0xff]   ;;  %v3543_v37 = vld [vmem:[#allocation16 + $0x50] ss:$8 sps:$4 sm:$0xff]  }
 0xdcc   : > { %2462 = vadd.xlane.f32.xlu0 %v2460_v29  ;;  %2580 = vmatpush1.bf16.msra.mxu0 %v3537_v33  ;;  %v3544_v14 = vld [vmem:[#allocation16 + $0x44] ss:$8 sps:$4 sm:$0xff]   ;;  %v3546_v38 = vld [vmem:[#allocation16 + $0x40] ss:$8 sps:$4 sm:$0xff]   ;;  %v3547_v39 = vld [vmem:[#allocation16 + $0x34] ss:$8 sps:$4 sm:$0xff]  }
 0xdcd   : > { %2581 = vmatprep.subr.bf16.mxu0 %v3538_v35  ;;  %v3549_v40 = vld [vmem:[#allocation16 + $0x30] ss:$8 sps:$4 sm:$0xff]   ;;  %v3550_v41 = vld [vmem:[#allocation16 + $0x24] ss:$8 sps:$4 sm:$0xff]   ;;  %v3552_v42 = vld [vmem:[#allocation16 + $0x20] ss:$8 sps:$4 sm:$0xff]  }
 0xdce   : > { %v3553_v6 = vld [vmem:[#allocation16 + $0x14] ss:$8 sps:$4 sm:$0xff]   ;;  %v3555_v43 = vld [vmem:[#allocation16 + $0x10] ss:$8 sps:$4 sm:$0xff]   ;;  %v3556_v44 = vld [vmem:[#allocation16 + $0x4] ss:$8 sps:$4 sm:$0xff]  }
 0xdcf   : > { %v3558_v45 = vld [vmem:[#allocation16] ss:$8 sps:$4 sm:$0xff]   ;;  %v3910_v46 = vmov 0   ;;  %v2655_v16 = vand.u32 127, %v2654_v12  ;;  %vm2687_vm12 = vcmask 7168  }
 0xdd0   : > { %2464 = vadd.xlane.f32.xlu0 %v2461_v34  ;;  %2582 = vmatpush1.bf16.msra.mxu0 %v3540_v36  ;;  %v4560_v48 = vld [vmem:[%s4665_s11] sm:$0xff]  ;;  %v2623_v4 = vld [vmem:[%s4665_s11 + $0x8] sm:$0xff] }
 0xdd1   : > { %2583 = vmatprep.subr.bf16.mxu0 %v3541_v49  ;;  %2611 = vmatprep.mubr.bf16.mxu0 %v3910_v46  ;;  %v3038_v56 = vld [vmem:[%s4666_s14] ss:$0 sm:$0xff]  ;;  %v2656_v47 = vadd.s32 128, %v2655_v16  ;;  %vm2677_vm10 = vcmp.ne.s32.totalorder %v4560_v48, 0  ;;  %vm2678_vm11 = vcmp.ne.s32.totalorder %v2623_v4, 0 }
 0xdd2   : > { %3533 = vset.pattern.permute.xlu0 %v3910_v46  ;;  %3534 = vset.pattern.permute.xlu1 %v3910_v46 }
 0xdd4   : > { %2584 = vmatpush1.bf16.msra.mxu0 %v3543_v37 }
 0xdd5   : > { %2585 = vmatprep.subr.bf16.mxu0 %v3544_v14 }
 0xdd8   : > { %2586 = vmatpush1.bf16.msra.mxu0 %v3546_v38 }
 0xdd9   : > { %2587 = vmatprep.subr.bf16.mxu0 %v3547_v39 }
 0xddc   : > { %2588 = vmatpush1.bf16.msra.mxu0 %v3549_v40 }
 0xddd   : > { %2589 = vmatprep.subr.bf16.mxu0 %v3550_v41 }
 0xde0   : > { %2590 = vmatpush1.bf16.msra.mxu0 %v3552_v42  ;;  %v3911_v42 = vmov 0.0  }
 0xde1   : > { %2591 = vmatprep.subr.bf16.mxu0 %v3553_v6  ;;  %v3055_v6 = vsel %vm2677_vm10, 1.0, %v3911_v42 }
 0xde4   : > { %2592 = vmatpush1.bf16.msra.mxu0 %v3555_v43 }
 0xde5   : > { %2593 = vmatprep.subr.bf16.mxu0 %v3556_v44  ;;  %v3056_v44 = vsel %vm2678_vm11, 1.0, %v3911_v42 }
 0xde6   : > { %2658 = vperm.xlu0 %3533, %v4560_v48  }
 0xde8   : > { %2594 = vmatpush1.bf16.msra.mxu0 %v3558_v45 }
 0xe55   : > { %v2463_v51 = vpop.xlane.xlu0 %2462 }
 0xe56   : > { %v2466_v28 = vmul.f32 0.0078125, %v2463_v51 }
 0xe58   : > { %v2468_v52 = vadd.f32 1e-06, %v2466_v28 }
 0xe59   : > { %v2465_v53 = vpop.xlane.xlu0 %2464 }
 0xe5a   : > { %3559 = vrsqrt.f32 %v2468_v52  ;;  %v2467_v20 = vmul.f32 0.0078125, %v2465_v53 }
 0xe5c   : > { %v2469_v54 = vadd.f32 1e-06, %v2467_v20  ;;  %v2700_v20 = vsel %vm2687_vm12, %v3055_v6, 0.0 }
 0xe5e   : > { %3561 = vrsqrt.f32 %v2469_v54  ;;  %v2701_v54 = vsel %vm2687_vm12, %v3056_v44, 0.0 }
 0xe5f   : > { %v2702_v48 = vadd.f32 %v2701_v54, %v2700_v20 }
 0xe61   : > { %v2659_v50 = vpop.permute.xlu0 %2658 }
 0xe62   : > { %vm2664_vm6 = vcmp.eq.s32.totalorder %v2656_v47, %v2659_v50  ;;  %vm2663_vm7 = vcmp.eq.s32.totalorder %v2655_v16, %v2659_v50 }
 0xe67   : > { %v3560_v55 = vpop.eup %3559 }
 0xe68   : > { %v2472_v0 = vmul.f32 %v3560_v55, %v2451_v23 }
 0xe6a   : > { %v2480_v58 = vmul.f32 %v3038_v56, %v2472_v0 }
 0xe6b   : > { %v3562_v24 = vpop.eup %3561 }
 0xe6c   : > { %v2473_v57 = vmul.f32 %v3562_v24, %v2452_v27 }
 0xe6e   : > { %v2481_v59 = vmul.f32 %v3038_v56, %v2473_v57 }
 0xe70   : > { %v2482_v60 = vpack.c.bf16 %v2481_v59, %v2480_v58 }
 0xe72   : > { %2612 = vmatmul.mubr.bf16.vlgmr.msra.gmra.mxu0 %v2482_v60 }
 0xf32   : > { %v2613_v61 = vpop.f32.mrf.mxu0 }
 0xf33   : > { %v2667_v26 = vsel %vm2663_vm7, %v2613_v61, 0.0 }
 0xf34   : > { %v2615_v62 = vpop.f32.mrf.mxu0 }
 0xf35   : > { %v2624_v63 = vmax.f32 %v2613_v61, %v2615_v62  ;;  %v2668_v22 = vsel %vm2664_vm6, %v2615_v62, 0.0 }
 0xf36   : > { %v2617_v1 = vpop.f32.mrf.mxu0  ;;  %v2671_v27 = vadd.f32 %v2668_v22, %v2667_v26 }
 0xf37   : > { %2625 = vmax.xlane.f32.xlu1 %v2624_v63 }
 0xf38   : > { %v2619_v2 = vpop.f32.mrf.mxu0 }
 0xf39   : > { %v2627_v3 = vmax.f32 %v2617_v1, %v2619_v2 }
 0xf3b   : > { %2628 = vmax.xlane.f32.xlu1 %v2627_v3 }
 0xf4c   : > { %2661 = vperm.xlu1 %3534, %v2623_v4  }
 0xfc0   : > { %v2626_v5 = vpop.xlane.xlu1 %2625 }
 0xfc1   : > { %v2630_v7 = vsub.f32 %v2613_v61, %v2626_v5  ;;  %v2631_v8 = vsub.f32 %v2615_v62, %v2626_v5 }
 0xfc3   : > { %v2634_v9 = vmul.f32 1.442695, %v2630_v7  ;;  %v2636_v10 = vmul.f32 1.442695, %v2631_v8 }
 0xfc4   : > { %v2629_v30 = vpop.xlane.xlu1 %2628 }
 0xfc5   : > { %3563 = vpow2.f32 %v2634_v9  ;;  %v2632_v11 = vsub.f32 %v2617_v1, %v2629_v30  ;;  %v2633_v32 = vsub.f32 %v2619_v2, %v2629_v30 }
 0xfc6   : > { %3565 = vpow2.f32 %v2636_v10 }
 0xfc7   : > { %v2638_v13 = vmul.f32 1.442695, %v2632_v11  ;;  %v2640_v15 = vmul.f32 1.442695, %v2633_v32 }
 0xfc8   : > { %v2662_v19 = vpop.permute.xlu1 %2661 }
 0xfc9   : > { %3567 = vpow2.f32 %v2638_v13  ;;  %vm2665_vm8 = vcmp.eq.s32.totalorder %v2655_v16, %v2662_v19  ;;  %vm2666_vm9 = vcmp.eq.s32.totalorder %v2656_v47, %v2662_v19 }
 0xfca   : > { %3569 = vpow2.f32 %v2640_v15  ;;  %v2669_v31 = vsel %vm2665_vm8, %v2617_v1, 0.0  ;;  %v2670_v33 = vsel %vm2666_vm9, %v2619_v2, 0.0 }
 0xfcb   : > { %v2674_v34 = vadd.f32 %v2670_v33, %v2669_v31 }
 0xfd2   : > { %v3564_v17 = vpop.eup %3563 }
 0xfd3   : > { %v3566_v18 = vpop.eup %3565 }
 0xfd4   : > { %v2642_v21 = vadd.f32 %v3566_v18, %v3564_v17 }
 0xfd6   : > { %v3568_v23 = vpop.eup %3567  ;;  %2643 = vadd.xlane.f32.xlu1 %v2642_v21 }
 0xfd7   : > { %v3570_v25 = vpop.eup %3569 }
 0xfd8   : > { %v2645_v29 = vadd.f32 %v3570_v25, %v3568_v23 }
 0xfda   : > { %2672 = vadd.xlane.f32.xlu1 %v2671_v27  ;;  %2646 = vadd.xlane.f32.xlu0 %v2645_v29 }
 0xfde   : > { %2675 = vadd.xlane.f32.xlu1 %v2674_v34 }
0x105f   : > { %v2644_v35 = vpop.xlane.xlu1 %2643 }
0x1060   : > { %3571 = vlog2.f32 %v2644_v35 }
0x1063   : > { %v2647_v36 = vpop.xlane.xlu0 %2646  ;;  %v2673_v14 = vpop.xlane.xlu1 %2672 }
0x1064   : > { %3573 = vlog2.f32 %v2647_v36 }
0x1067   : > { %v2676_v45 = vpop.xlane.xlu1 %2675 }
0x106d   : > { %v3572_v49 = vpop.eup %3571 }
0x106e   : > { %v2649_v37 = vmul.f32 0.6931472, %v3572_v49 }
0x1070   : > { %v2652_v38 = vadd.f32 %v2649_v37, %v2626_v5 }
0x1071   : > { %v3574_v39 = vpop.eup %3573 }
0x1072   : > { %v2651_v40 = vmul.f32 0.6931472, %v3574_v39  ;;  %v2683_v41 = vsub.f32 %v2652_v38, %v2673_v14 }
0x1074   : > { %v2653_v43 = vadd.f32 %v2651_v40, %v2629_v30  ;;  %v2685_v46 = vmul.f32 %v3055_v6, %v2683_v41 }
0x1076   : > { %v2684_v51 = vsub.f32 %v2653_v43, %v2676_v45  ;;  %v2688_v52 = vsel %vm2687_vm12, %v2685_v46, 0.0 }
0x1078   : > { %v2686_v28 = vmul.f32 %v3056_v44, %v2684_v51 }
0x107a   : > { %v2689_v53 = vsel %vm2687_vm12, %v2686_v28, 0.0 }
0x107b   : > { %v2690_v55 = vadd.f32 %v2689_v53, %v2688_v52 }
0x107d   : > { %2691 = vadd.xlane.f32.xlu1 %v2690_v55 }
0x1081   : > { %2703 = vadd.xlane.f32.xlu1 %v2702_v48 }
0x1106   : > { %v2692_v0 = vpop.xlane.xlu1 %2691 }
0x1107   : > { %v2693_v24 = vrot.slane %v2692_v0, 4 }
0x1109   : > { %v2694_v56 = vadd.f32 %v2693_v24, %v2692_v0 }
0x110a   : > { %v2704_v57 = vpop.xlane.xlu1 %2703 }
0x110b   : > { %v2695_v58 = vrot.slane %v2694_v56, 2  ;;  %v2705_v59 = vrot.slane %v2704_v57, 4 }
0x110d   : > { %v2706_v60 = vadd.f32 %v2705_v59, %v2704_v57  ;;  %v2696_v61 = vadd.f32 %v2695_v58, %v2694_v56 }
0x110f   : > { %v2707_v62 = vrot.slane %v2706_v60, 2  ;;  %v2697_v63 = vrot.slane %v2696_v61, 1 }
0x1111   : > { %v2708_v1 = vadd.f32 %v2707_v62, %v2706_v60  ;;  %v2698_v2 = vadd.f32 %v2697_v63, %v2696_v61 }
0x1113   : > { %3235 = vpush %v2698_v2  ;;  %v2709_v3 = vrot.slane %v2708_v1, 1 }
0x1115   : > { %v2710_v4 = vadd.f32 %v2709_v3, %v2708_v1 }
0x1117   : > { %3237 = vpush %v2710_v4 }
0x1144   : > { %s3236_s2 = spop %3235 }
0x1148   : > { %s3238_s0 = spop %3237 }
0x1149   : > { %v2712_v5 = vstv %s3238_s0 }
0x114a   : > { %3575 = vrcp.f32 %v2712_v5 }
0x1157   : > { %v3576_v7 = vpop.eup %3575 }
0x1158   : > { %3239 = vpush %v3576_v7 }
0x1189   : > { %s3240_s1 = spop %3239 }
0x118a   : > { %s2715_s19 = smul.f32 %s3240_s1, %s3236_s2 }
0x118c   : > { %2717 = sst [smem:[#allocation17]] %s2715_s19 }
0x118d PF: > { %p3313_p1 = scmp.eq.s32.totalorder %s4007_s17, 1  ;;  %s3912_s28 = smov [#allocation17]  }
0x118e   : > { %s4667_s24 = sld [smem:[#allocation35_spill]] }
0x1194   : > { %3270 = dma.smem_to_hbm (%p3313_p1), %s3912_s28, 16, %s4667_s24, [#allocation6]  }
0x1195   : > { %3866 = dma.done.wait (%p3313_p1), [#allocation6], 16  }
0x1196   : > { %3868 = vsyncadd (%p3313_p1), [#allocation6], 4294967280 }
0x1197   : > { %2731 = sfence }
0x1198 PF: > { %s4668_s16 = sld [smem:[#allocation25_spill]]  ;;  %s4671_s29 = smov %s3875_s30 }
0x1199   : > { %s4669_s23 = sld [smem:[#allocation24_spill]] }
0x119a   : > { %s4670_s15 = sld [smem:[#allocation26_spill]] }
0x119e   : > { %p25_p3 = scmp.ge.s32.totalorder %s4668_s16, 4  }
0x119f   : > { %s4672_s30 = smov %s4669_s23 }
0x11a0   :  { %27 = sbr.rel (!%p25_p3) target bundleno = 15 (0xf), region = 180 }
0x11a5   :  { %2737 = vsyncpa [#allocation5], 1 }
0x11a6   :  { %2739 = vsyncpa [#allocation5 + $0x1], 1 }
0x11a7   :  { %2740 = vsyncpa [#allocation8], 1 }
0x11a8   :  { %2741 = vsyncpa [#allocation11], 1 }
0x11a9   :  { %2742 = vsyncpa [#allocation6], 1 }
0x11aa   :  { %2744 = vsyncpa [#allocation6 + $0x1], 1 }

</bundles_post_ra>
